<compile_context>
chip_gen: v6e
topology: v6e:2x2x1
jax: 0.10.0
libtpu: 0.0.40
codegen_flags: <defaults>
</compile_context>

<pallas_src>
import functools

import jax
import jax.numpy as jnp
from jax import lax
from jax.experimental import pallas as pl
from jax.experimental.pallas import tpu as pltpu

BN_EPS = 1e-5
LEAKY_SLOPE = 0.2   # module explicitly uses nn.LeakyReLU(0.2)


def _leaky_relu(x):
    return jnp.where(x >= 0, x, LEAKY_SLOPE * x)


def _batchnorm_train(x, gamma, beta):
    # PyTorch BatchNorm1d, training mode: batch (row) statistics, biased variance.
    mean = jnp.mean(x, axis=0, keepdims=True)
    var = jnp.mean((x - mean) ** 2, axis=0, keepdims=True)
    return (x - mean) * lax.rsqrt(var + BN_EPS) * gamma + beta


def conv_layer_kernel(
    node_ref, edge_ref, idx1c_ref, idx2c_ref, inv_cnt_ref,
    we1_ref, be1_ref, we2_ref, be2_ref, we3_ref, be3_ref,
    wv1_ref, bv1_ref, wv2_ref, bv2_ref, wv3_ref, bv3_ref,
    g1_ref, bt1_ref, g2_ref, bt2_ref,
    node_out_ref, edge_out_ref,
    *, fuse_k, pv, pe,
):
    f32 = jnp.float32
    bf16 = jnp.bfloat16

    node_f32 = node_ref[...]                     # (N, Pv) f32
    edge_f32 = edge_ref[...]                     # (E, Pe) f32
    node_bf = node_f32.astype(bf16)
    edge_bf = edge_f32.astype(bf16)
    idx1c = idx1c_ref[...]                       # (E, 1) int32
    idx2c = idx2c_ref[...]                       # (E, 1) int32

    N = node_f32.shape[0]
    E = edge_f32.shape[0]

    # ---- gather node_fea[idx1], node_fea[idx2] via one-hot matmuls (MXU) ----
    # TODO(synk): for large N switch to a scalar-prefetched DMA/row gather.
    iota_en = lax.broadcasted_iota(jnp.int32, (E, N), 1)
    oh1_f32 = (iota_en == idx1c).astype(f32)             # (E, N), exact 0/1
    oh2_bf = (iota_en == idx2c).astype(bf16)             # (E, N)
    oh1_bf = oh1_f32.astype(bf16)
    node1 = jnp.dot(oh1_bf, node_bf, preferred_element_type=f32)   # (E, Pv)
    node2 = jnp.dot(oh2_bf, node_bf, preferred_element_type=f32)   # (E, Pv)

    # ---- phi_e MLP on edges ----
    if fuse_k:
        # One wide-K pass (K = 2*Pv + Pe) fills the 256-deep MXU on v6e/v7x.
        z = jnp.concatenate(
            [node1.astype(bf16), node2.astype(bf16), edge_bf], axis=1)
        h = jnp.dot(z, we1_ref[...], preferred_element_type=f32)
    else:
        # v5e and older: MXU depth is 128, keep split K=128 matmuls.
        h = jnp.dot(node1.astype(bf16), we1_ref[0:pv, :],
                    preferred_element_type=f32)
        h = h + jnp.dot(node2.astype(bf16), we1_ref[pv:2 * pv, :],
                        preferred_element_type=f32)
        h = h + jnp.dot(edge_bf, we1_ref[2 * pv:, :],
                        preferred_element_type=f32)
    h = _leaky_relu(h + be1_ref[...])
    h = _leaky_relu(jnp.dot(h.astype(bf16), we2_ref[...],
                            preferred_element_type=f32) + be2_ref[...])
    h = jnp.dot(h.astype(bf16), we3_ref[...],
                preferred_element_type=f32) + be3_ref[...]

    # ---- bn1 + residual on edges ----
    ek_prime = _batchnorm_train(h, g1_ref[...], bt1_ref[...])      # (E, Pe)
    edge_out_ref[...] = edge_f32 + ek_prime

    # ---- scatter_mean(ek_prime, idx1): contract the E axis of the existing
    #      one-hot (no second iota / transpose), f32 accumulation, exact
    #      host-precomputed inverse counts. ----
    sums = lax.dot_general(
        oh1_f32, ek_prime,
        dimension_numbers=(((0,), (0,)), ((), ())),
        preferred_element_type=f32)                                  # (N, Pe)
    vi_e_bar = sums * inv_cnt_ref[...]                               # (N, Pe)

    # ---- phi_v MLP on nodes ----
    if fuse_k:
        z2 = jnp.concatenate([vi_e_bar.astype(bf16), node_bf], axis=1)
        h2 = jnp.dot(z2, wv1_ref[...], preferred_element_type=f32)
    else:
        h2 = jnp.dot(vi_e_bar.astype(bf16), wv1_ref[0:pe, :],
                     preferred_element_type=f32)
        h2 = h2 + jnp.dot(node_bf, wv1_ref[pe:, :],
                          preferred_element_type=f32)
    h2 = _leaky_relu(h2 + bv1_ref[...])
    h2 = _leaky_relu(jnp.dot(h2.astype(bf16), wv2_ref[...],
                             preferred_element_type=f32) + bv2_ref[...])
    h2 = jnp.dot(h2.astype(bf16), wv3_ref[...],
                 preferred_element_type=f32) + bv3_ref[...]

    # ---- bn2 + residual on nodes ----
    vi_prime = _batchnorm_train(h2, g2_ref[...], bt2_ref[...])      # (N, Pv)
    node_out_ref[...] = node_f32 + vi_prime


def _pad2(x, rows, cols):
    """Zero-pad a 2-D array up to (rows, cols)."""
    return jnp.pad(x, ((0, rows - x.shape[0]), (0, cols - x.shape[1])))


def _use_fused_k():
    """Fuse layer-1 K on 256-deep-MXU generations (v6e/v7x), split on <= v5."""
    try:
        kind = jax.devices()[0].device_kind.lower()
    except Exception:  # pragma: no cover - be permissive in odd environments
        return True
    return not any(tag in kind for tag in ("v2", "v3", "v4", "v5"))


def conv_layer_forward(node_fea, idx1, idx2, edge_fea, params):
    N, dim_v = node_fea.shape
    E, dim_e = edge_fea.shape
    # scatter_mean(out=zeros_like(node_fea)) in the PyTorch module is only
    # shape-consistent when dim_e == dim_v; make the assumption explicit.
    assert dim_v == dim_e, "ConvLayer requires dim_v == dim_e"

    Pv = pl.cdiv(dim_v, 128) * 128
    Pe = pl.cdiv(dim_e, 128) * 128

    f32 = jnp.float32
    bf16 = jnp.bfloat16

    node_p = _pad2(node_fea.astype(f32), N, Pv)
    edge_p = _pad2(edge_fea.astype(f32), E, Pe)

    idx1 = idx1.astype(jnp.int32)
    idx2 = idx2.astype(jnp.int32)
    idx1c = idx1.reshape(E, 1)
    idx2c = idx2.reshape(E, 1)

    # Exact inverse segment counts for the scatter-mean, computed once on host.
    counts = jnp.zeros((N,), f32).at[idx1].add(1.0)
    inv_cnt = (1.0 / jnp.maximum(counts, 1.0)).reshape(N, 1)

    # First-layer weights stacked as aligned 128-row blocks so the same tensor
    # serves both the fused wide-K path and the split-K (v5e) path.
    we1 = params["we1"]
    we1_stack = jnp.concatenate(
        [_pad2(we1[:dim_v], Pv, Pe),
         _pad2(we1[dim_v:2 * dim_v], Pv, Pe),
         _pad2(we1[2 * dim_v:], Pe, Pe)], axis=0).astype(bf16)   # (2Pv+Pe, Pe)
    we2 = _pad2(params["we2"], Pe, Pe).astype(bf16)
    we3 = _pad2(params["we3"], Pe, Pe).astype(bf16)

    wv1 = params["wv1"]
    wv1_stack = jnp.concatenate(
        [_pad2(wv1[:dim_e], Pe, Pv),
         _pad2(wv1[dim_e:], Pv, Pv)], axis=0).astype(bf16)       # (Pe+Pv, Pv)
    wv2 = _pad2(params["wv2"], Pv, Pv).astype(bf16)
    wv3 = _pad2(params["wv3"], Pv, Pv).astype(bf16)

    be1 = _pad2(params["be1"].astype(f32), 1, Pe)
    be2 = _pad2(params["be2"].astype(f32), 1, Pe)
    be3 = _pad2(params["be3"].astype(f32), 1, Pe)
    bv1 = _pad2(params["bv1"].astype(f32), 1, Pv)
    bv2 = _pad2(params["bv2"].astype(f32), 1, Pv)
    bv3 = _pad2(params["bv3"].astype(f32), 1, Pv)
    g1 = _pad2(params["g1"].astype(f32), 1, Pe)
    bt1 = _pad2(params["bt1"].astype(f32), 1, Pe)
    g2 = _pad2(params["g2"].astype(f32), 1, Pv)
    bt2 = _pad2(params["bt2"].astype(f32), 1, Pv)

    args = (
        node_p, edge_p, idx1c, idx2c, inv_cnt,
        we1_stack, be1, we2, be2, we3, be3,
        wv1_stack, bv1, wv2, bv2, wv3, bv3,
        g1, bt1, g2, bt2,
    )

    out_bytes = 4 * (N * Pv + E * Pe)
    in_bytes = sum(int(a.size) * a.dtype.itemsize for a in args)
    footprint = in_bytes + out_bytes

    # Advisory cost estimate so XLA schedules around the custom call sensibly.
    flops = (
        2 * 2 * E * N * Pv                       # one-hot gathers
        + 2 * N * E * Pe                         # one-hot scatter-sum
        + 2 * E * (2 * Pv + Pe) * Pe             # phi_e layer 1
        + 2 * 2 * E * Pe * Pe                    # phi_e layers 2,3
        + 2 * N * (Pe + Pv) * Pv                 # phi_v layer 1
        + 2 * 2 * N * Pv * Pv                    # phi_v layers 2,3
    )
    cost = pl.CostEstimate(flops=int(flops),
                           transcendentals=int(Pe + Pv),
                           bytes_accessed=int(footprint))

    # Size the VMEM request from the real footprint (with headroom) instead of
    # grabbing all of a v7x TensorCore's 64 MiB.
    vmem_limit = int(min(64 << 20, max(8 << 20, 8 * footprint)))

    kernel = functools.partial(
        conv_layer_kernel, fuse_k=_use_fused_k(), pv=Pv, pe=Pe)

    vmem = pl.BlockSpec(memory_space=pltpu.MemorySpace.VMEM)
    node_new_p, edge_new_p = pl.pallas_call(
        kernel,
        out_shape=(
            jax.ShapeDtypeStruct((N, Pv), f32),
            jax.ShapeDtypeStruct((E, Pe), f32),
        ),
        in_specs=[vmem] * len(args),
        out_specs=(vmem, vmem),
        compiler_params=pltpu.CompilerParams(vmem_limit_bytes=vmem_limit),
        cost_estimate=cost,
    )(*args)

    return node_new_p[:, :dim_v], edge_new_p[:, :dim_e]


# ---------------- pure-JAX f32 reference (PyTorch semantics) ----------------
def reference_forward(node_fea, idx1, idx2, edge_fea, params):
    N = node_fea.shape[0]
    E = edge_fea.shape[0]
    node1 = node_fea[idx1]
    node2 = node_fea[idx2]
    z = jnp.concatenate([node1, node2, edge_fea], axis=1)

    h = _leaky_relu(z @ params["we1"] + params["be1"])
    h = _leaky_relu(h @ params["we2"] + params["be2"])
    h = h @ params["we3"] + params["be3"]
    ek_prime = _batchnorm_train(h, params["g1"], params["bt1"])
    edge_new = edge_fea + ek_prime

    sums = jax.ops.segment_sum(ek_prime, idx1, num_segments=N)
    counts = jax.ops.segment_sum(jnp.ones((E,), jnp.float32), idx1, num_segments=N)
    vi_e_bar = jnp.where(counts[:, None] > 0,
                         sums / jnp.maximum(counts[:, None], 1.0), 0.0)

    z2 = jnp.concatenate([vi_e_bar, node_fea], axis=1)
    h2 = _leaky_relu(z2 @ params["wv1"] + params["bv1"])
    h2 = _leaky_relu(h2 @ params["wv2"] + params["bv2"])
    h2 = h2 @ params["wv3"] + params["bv3"]
    vi_prime = _batchnorm_train(h2, params["g2"], params["bt2"])
    node_new = node_fea + vi_prime
    return node_new, edge_new


def make_params(key, dim_v, dim_e):
    # Deterministic synthetic init.  Linear weights stored as [in, out]
    # (already transposed w.r.t. PyTorch's [out, in] convention).
    dim_te = 2 * dim_v + dim_e
    dim_tv = dim_v + dim_e
    ks = jax.random.split(key, 12)
    return {
        "we1": 0.1 * jax.random.normal(ks[0], (dim_te, dim_e), jnp.float32),
        "be1": 0.01 * jax.random.normal(ks[1], (1, dim_e), jnp.float32),
        "we2": 0.1 * jax.random.normal(ks[2], (dim_e, dim_e), jnp.float32),
        "be2": 0.01 * jax.random.normal(ks[3], (1, dim_e), jnp.float32),
        "we3": 0.1 * jax.random.normal(ks[4], (dim_e, dim_e), jnp.float32),
        "be3": 0.01 * jax.random.normal(ks[5], (1, dim_e), jnp.float32),
        "wv1": 0.1 * jax.random.normal(ks[6], (dim_tv, dim_v), jnp.float32),
        "bv1": 0.01 * jax.random.normal(ks[7], (1, dim_v), jnp.float32),
        "wv2": 0.1 * jax.random.normal(ks[8], (dim_v, dim_v), jnp.float32),
        "bv2": 0.01 * jax.random.normal(ks[9], (1, dim_v), jnp.float32),
        "wv3": 0.1 * jax.random.normal(ks[10], (dim_v, dim_v), jnp.float32),
        "bv3": 0.01 * jax.random.normal(ks[11], (1, dim_v), jnp.float32),
        # BatchNorm affine params (PyTorch default init: gamma=1, beta=0).
        "g1": jnp.ones((1, dim_e), jnp.float32),
        "bt1": jnp.zeros((1, dim_e), jnp.float32),
        "g2": jnp.ones((1, dim_v), jnp.float32),
        "bt2": jnp.zeros((1, dim_v), jnp.float32),
    }


if __name__ == "__main__":
    # NOTE: the PyTorch module's scatter_mean uses out=zeros_like(node_fea),
    # which is only shape-consistent when dim_e == dim_v; we mirror that.
    dim_v = dim_e = 32
    N, E = 16, 64

    key = jax.random.PRNGKey(0)
    k_node, k_edge, k_i1, k_i2, k_par = jax.random.split(key, 5)

    node_fea = jax.random.normal(k_node, (N, dim_v), jnp.float32)
    edge_fea = jax.random.normal(k_edge, (E, dim_e), jnp.float32)
    idx1 = jax.random.randint(k_i1, (E,), 0, N, jnp.int32)
    idx2 = jax.random.randint(k_i2, (E,), 0, N, jnp.int32)
    params = make_params(k_par, dim_v, dim_e)

    node_new, edge_new = conv_layer_forward(node_fea, idx1, idx2, edge_fea, params)
    node_new, edge_new = jax.block_until_ready((node_new, edge_new))

    node_ref, edge_ref = reference_forward(node_fea, idx1, idx2, edge_fea, params)
    # bf16 MXU operands (f32 accumulation) vs pure-f32 reference -> loosened
    # tolerance; the scatter-mean path is now exact-f32 which reduces drift.
    assert jnp.allclose(node_new, node_ref, rtol=5e-2, atol=5e-2), \
        f"node mismatch, max abs diff {jnp.max(jnp.abs(node_new - node_ref))}"
    assert jnp.allclose(edge_new, edge_ref, rtol=5e-2, atol=5e-2), \
        f"edge mismatch, max abs diff {jnp.max(jnp.abs(edge_new - edge_ref))}"

    print("KERNEL_OK")
</pallas_src>

<mosaic_0001>
module attributes {stable_mosaic.version = 11 : i64} {
  func.func @conv_layer_kernel(%arg0: memref<16x128xf32, #tpu.memory_space<vmem>>, %arg1: memref<64x128xf32, #tpu.memory_space<vmem>>, %arg2: memref<64x1xi32, #tpu.memory_space<vmem>>, %arg3: memref<64x1xi32, #tpu.memory_space<vmem>>, %arg4: memref<16x1xf32, #tpu.memory_space<vmem>>, %arg5: memref<384x128xbf16, #tpu.memory_space<vmem>>, %arg6: memref<1x128xf32, #tpu.memory_space<vmem>>, %arg7: memref<128x128xbf16, #tpu.memory_space<vmem>>, %arg8: memref<1x128xf32, #tpu.memory_space<vmem>>, %arg9: memref<128x128xbf16, #tpu.memory_space<vmem>>, %arg10: memref<1x128xf32, #tpu.memory_space<vmem>>, %arg11: memref<256x128xbf16, #tpu.memory_space<vmem>>, %arg12: memref<1x128xf32, #tpu.memory_space<vmem>>, %arg13: memref<128x128xbf16, #tpu.memory_space<vmem>>, %arg14: memref<1x128xf32, #tpu.memory_space<vmem>>, %arg15: memref<128x128xbf16, #tpu.memory_space<vmem>>, %arg16: memref<1x128xf32, #tpu.memory_space<vmem>>, %arg17: memref<1x128xf32, #tpu.memory_space<vmem>>, %arg18: memref<1x128xf32, #tpu.memory_space<vmem>>, %arg19: memref<1x128xf32, #tpu.memory_space<vmem>>, %arg20: memref<1x128xf32, #tpu.memory_space<vmem>>, %arg21: memref<16x128xf32, #tpu.memory_space<vmem>>, %arg22: memref<64x128xf32, #tpu.memory_space<vmem>>) attributes {dimension_semantics = [], scalar_prefetch = 0 : i64, scratch_operands = 0 : i64, tpu.core_type = #tpu.core_type<tc>} {
    %c0 = arith.constant 0 : index
    %c0_0 = arith.constant 0 : index
    %0 = vector.load %arg0[%c0, %c0_0] : memref<16x128xf32, #tpu.memory_space<vmem>>, vector<16x128xf32>
    %c0_1 = arith.constant 0 : index
    %c0_2 = arith.constant 0 : index
    %1 = vector.load %arg1[%c0_1, %c0_2] : memref<64x128xf32, #tpu.memory_space<vmem>>, vector<64x128xf32>
    %2 = arith.truncf %0 : vector<16x128xf32> to vector<16x128xbf16>
    %3 = arith.truncf %1 : vector<64x128xf32> to vector<64x128xbf16>
    %c0_3 = arith.constant 0 : index
    %c0_4 = arith.constant 0 : index
    %4 = vector.load %arg2[%c0_3, %c0_4] : memref<64x1xi32, #tpu.memory_space<vmem>>, vector<64x1xi32>
    %c0_5 = arith.constant 0 : index
    %c0_6 = arith.constant 0 : index
    %5 = vector.load %arg3[%c0_5, %c0_6] : memref<64x1xi32, #tpu.memory_space<vmem>>, vector<64x1xi32>
    %6 = tpu.iota {dimensions = array<i32: 1>} : vector<64x16xi32>
    %7 = vector.broadcast %4 : vector<64x1xi32> to vector<64x16xi32>
    %8 = arith.cmpi eq, %6, %7 : vector<64x16xi32>
    %9 = arith.extui %8 : vector<64x16xi1> to vector<64x16xi32>
    %10 = arith.sitofp %9 : vector<64x16xi32> to vector<64x16xf32>
    %11 = vector.broadcast %5 : vector<64x1xi32> to vector<64x16xi32>
    %12 = arith.cmpi eq, %6, %11 : vector<64x16xi32>
    %13 = arith.extui %12 : vector<64x16xi1> to vector<64x16xi32>
    %14 = arith.sitofp %13 : vector<64x16xi32> to vector<64x16xf32>
    %15 = arith.truncf %14 : vector<64x16xf32> to vector<64x16xbf16>
    %16 = arith.truncf %10 : vector<64x16xf32> to vector<64x16xbf16>
    %cst = arith.constant dense<0.000000e+00> : vector<64x128xf32>
    %17 = tpu.matmul %16, %2, %cst {dimension_numbers = #tpu.dot_dimension_numbers<[1], [0], [0], [1], [0, 0, 1, 1], [], []>} : vector<64x16xbf16>, vector<16x128xbf16>, vector<64x128xf32> -> vector<64x128xf32>
    %cst_7 = arith.constant dense<0.000000e+00> : vector<64x128xf32>
    %18 = tpu.matmul %15, %2, %cst_7 {dimension_numbers = #tpu.dot_dimension_numbers<[1], [0], [0], [1], [0, 0, 1, 1], [], []>} : vector<64x16xbf16>, vector<16x128xbf16>, vector<64x128xf32> -> vector<64x128xf32>
    %19 = arith.truncf %17 : vector<64x128xf32> to vector<64x128xbf16>
    %20 = arith.truncf %18 : vector<64x128xf32> to vector<64x128xbf16>
    %21 = tpu.concatenate %19, %20, %3 in 1 : vector<64x128xbf16>, vector<64x128xbf16>, vector<64x128xbf16> -> vector<64x384xbf16>
    %c0_8 = arith.constant 0 : index
    %c0_9 = arith.constant 0 : index
    %22 = vector.load %arg5[%c0_8, %c0_9] : memref<384x128xbf16, #tpu.memory_space<vmem>>, vector<384x128xbf16>
    %cst_10 = arith.constant dense<0.000000e+00> : vector<64x128xf32>
    %23 = tpu.matmul %21, %22, %cst_10 {dimension_numbers = #tpu.dot_dimension_numbers<[1], [0], [0], [1], [0, 0, 1, 1], [], []>} : vector<64x384xbf16>, vector<384x128xbf16>, vector<64x128xf32> -> vector<64x128xf32>
    %c0_11 = arith.constant 0 : index
    %c0_12 = arith.constant 0 : index
    %24 = vector.load %arg6[%c0_11, %c0_12] : memref<1x128xf32, #tpu.memory_space<vmem>>, vector<1x128xf32>
    %25 = vector.broadcast %24 : vector<1x128xf32> to vector<64x128xf32>
    %26 = arith.addf %23, %25 : vector<64x128xf32>
    %cst_13 = arith.constant 0.000000e+00 : f32
    %27 = vector.broadcast %cst_13 : f32 to vector<64x128xf32>
    %28 = arith.cmpf oge, %26, %27 : vector<64x128xf32>
    %cst_14 = arith.constant 2.000000e-01 : f32
    %29 = vector.broadcast %cst_14 : f32 to vector<64x128xf32>
    %30 = arith.mulf %29, %26 : vector<64x128xf32>
    %31 = arith.select %28, %26, %30 : vector<64x128xi1>, vector<64x128xf32>
    %32 = arith.truncf %31 : vector<64x128xf32> to vector<64x128xbf16>
    %c0_15 = arith.constant 0 : index
    %c0_16 = arith.constant 0 : index
    %33 = vector.load %arg7[%c0_15, %c0_16] : memref<128x128xbf16, #tpu.memory_space<vmem>>, vector<128x128xbf16>
    %cst_17 = arith.constant dense<0.000000e+00> : vector<64x128xf32>
    %34 = tpu.matmul %32, %33, %cst_17 {dimension_numbers = #tpu.dot_dimension_numbers<[1], [0], [0], [1], [0, 0, 1, 1], [], []>} : vector<64x128xbf16>, vector<128x128xbf16>, vector<64x128xf32> -> vector<64x128xf32>
    %c0_18 = arith.constant 0 : index
    %c0_19 = arith.constant 0 : index
    %35 = vector.load %arg8[%c0_18, %c0_19] : memref<1x128xf32, #tpu.memory_space<vmem>>, vector<1x128xf32>
    %36 = vector.broadcast %35 : vector<1x128xf32> to vector<64x128xf32>
    %37 = arith.addf %34, %36 : vector<64x128xf32>
    %cst_20 = arith.constant 0.000000e+00 : f32
    %38 = vector.broadcast %cst_20 : f32 to vector<64x128xf32>
    %39 = arith.cmpf oge, %37, %38 : vector<64x128xf32>
    %cst_21 = arith.constant 2.000000e-01 : f32
    %40 = vector.broadcast %cst_21 : f32 to vector<64x128xf32>
    %41 = arith.mulf %40, %37 : vector<64x128xf32>
    %42 = arith.select %39, %37, %41 : vector<64x128xi1>, vector<64x128xf32>
    %43 = arith.truncf %42 : vector<64x128xf32> to vector<64x128xbf16>
    %c0_22 = arith.constant 0 : index
    %c0_23 = arith.constant 0 : index
    %44 = vector.load %arg9[%c0_22, %c0_23] : memref<128x128xbf16, #tpu.memory_space<vmem>>, vector<128x128xbf16>
    %cst_24 = arith.constant dense<0.000000e+00> : vector<64x128xf32>
    %45 = tpu.matmul %43, %44, %cst_24 {dimension_numbers = #tpu.dot_dimension_numbers<[1], [0], [0], [1], [0, 0, 1, 1], [], []>} : vector<64x128xbf16>, vector<128x128xbf16>, vector<64x128xf32> -> vector<64x128xf32>
    %c0_25 = arith.constant 0 : index
    %c0_26 = arith.constant 0 : index
    %46 = vector.load %arg10[%c0_25, %c0_26] : memref<1x128xf32, #tpu.memory_space<vmem>>, vector<1x128xf32>
    %47 = vector.broadcast %46 : vector<1x128xf32> to vector<64x128xf32>
    %48 = arith.addf %45, %47 : vector<64x128xf32>
    %c0_27 = arith.constant 0 : index
    %c0_28 = arith.constant 0 : index
    %49 = vector.load %arg17[%c0_27, %c0_28] : memref<1x128xf32, #tpu.memory_space<vmem>>, vector<1x128xf32>
    %c0_29 = arith.constant 0 : index
    %c0_30 = arith.constant 0 : index
    %50 = vector.load %arg18[%c0_29, %c0_30] : memref<1x128xf32, #tpu.memory_space<vmem>>, vector<1x128xf32>
    %cst_31 = arith.constant dense<0.000000e+00> : vector<128xf32>
    %51 = vector.multi_reduction <add>, %48, %cst_31 [0] : vector<64x128xf32> to vector<128xf32>
    %52 = vector.shape_cast %51 : vector<128xf32> to vector<1x128xf32>
    %cst_32 = arith.constant 6.400000e+01 : f32
    %53 = vector.broadcast %cst_32 : f32 to vector<1x128xf32>
    %54 = arith.divf %52, %53 : vector<1x128xf32>
    %55 = vector.broadcast %54 : vector<1x128xf32> to vector<64x128xf32>
    %56 = arith.subf %48, %55 : vector<64x128xf32>
    %57 = arith.mulf %56, %56 : vector<64x128xf32>
    %cst_33 = arith.constant dense<0.000000e+00> : vector<128xf32>
    %58 = vector.multi_reduction <add>, %57, %cst_33 [0] : vector<64x128xf32> to vector<128xf32>
    %59 = vector.shape_cast %58 : vector<128xf32> to vector<1x128xf32>
    %cst_34 = arith.constant 6.400000e+01 : f32
    %60 = vector.broadcast %cst_34 : f32 to vector<1x128xf32>
    %61 = arith.divf %59, %60 : vector<1x128xf32>
    %62 = vector.broadcast %54 : vector<1x128xf32> to vector<64x128xf32>
    %63 = arith.subf %48, %62 : vector<64x128xf32>
    %cst_35 = arith.constant 9.99999974E-6 : f32
    %64 = vector.broadcast %cst_35 : f32 to vector<1x128xf32>
    %65 = arith.addf %61, %64 : vector<1x128xf32>
    %66 = math.rsqrt %65 : vector<1x128xf32>
    %67 = vector.broadcast %66 : vector<1x128xf32> to vector<64x128xf32>
    %68 = arith.mulf %63, %67 : vector<64x128xf32>
    %69 = vector.broadcast %49 : vector<1x128xf32> to vector<64x128xf32>
    %70 = arith.mulf %68, %69 : vector<64x128xf32>
    %71 = vector.broadcast %50 : vector<1x128xf32> to vector<64x128xf32>
    %72 = arith.addf %70, %71 : vector<64x128xf32>
    %73 = arith.addf %1, %72 : vector<64x128xf32>
    %c0_36 = arith.constant 0 : index
    %c0_37 = arith.constant 0 : index
    %74 = vector.load %arg22[%c0_36, %c0_37] : memref<64x128xf32, #tpu.memory_space<vmem>>, vector<64x128xf32>
    tpu.vector_store %arg22[%c0_36, %c0_37], %73 {strides = array<i32>} : memref<64x128xf32, #tpu.memory_space<vmem>>, vector<64x128xf32>,
    %cst_38 = arith.constant dense<0.000000e+00> : vector<16x128xf32>
    %75 = tpu.matmul %10, %72, %cst_38 {dimension_numbers = #tpu.dot_dimension_numbers<[0], [0], [1], [1], [0, 1, 1, 1], [], []>} : vector<64x16xf32>, vector<64x128xf32>, vector<16x128xf32> -> vector<16x128xf32>
    %c0_39 = arith.constant 0 : index
    %c0_40 = arith.constant 0 : index
    %76 = vector.load %arg4[%c0_39, %c0_40] : memref<16x1xf32, #tpu.memory_space<vmem>>, vector<16x1xf32>
    %77 = vector.broadcast %76 : vector<16x1xf32> to vector<16x128xf32>
    %78 = arith.mulf %75, %77 : vector<16x128xf32>
    %79 = arith.truncf %78 : vector<16x128xf32> to vector<16x128xbf16>
    %80 = tpu.concatenate %79, %2 in 1 : vector<16x128xbf16>, vector<16x128xbf16> -> vector<16x256xbf16>
    %c0_41 = arith.constant 0 : index
    %c0_42 = arith.constant 0 : index
    %81 = vector.load %arg11[%c0_41, %c0_42] : memref<256x128xbf16, #tpu.memory_space<vmem>>, vector<256x128xbf16>
    %cst_43 = arith.constant dense<0.000000e+00> : vector<16x128xf32>
    %82 = tpu.matmul %80, %81, %cst_43 {dimension_numbers = #tpu.dot_dimension_numbers<[1], [0], [0], [1], [0, 0, 1, 1], [], []>} : vector<16x256xbf16>, vector<256x128xbf16>, vector<16x128xf32> -> vector<16x128xf32>
    %c0_44 = arith.constant 0 : index
    %c0_45 = arith.constant 0 : index
    %83 = vector.load %arg12[%c0_44, %c0_45] : memref<1x128xf32, #tpu.memory_space<vmem>>, vector<1x128xf32>
    %84 = vector.broadcast %83 : vector<1x128xf32> to vector<16x128xf32>
    %85 = arith.addf %82, %84 : vector<16x128xf32>
    %cst_46 = arith.constant 0.000000e+00 : f32
    %86 = vector.broadcast %cst_46 : f32 to vector<16x128xf32>
    %87 = arith.cmpf oge, %85, %86 : vector<16x128xf32>
    %cst_47 = arith.constant 2.000000e-01 : f32
    %88 = vector.broadcast %cst_47 : f32 to vector<16x128xf32>
    %89 = arith.mulf %88, %85 : vector<16x128xf32>
    %90 = arith.select %87, %85, %89 : vector<16x128xi1>, vector<16x128xf32>
    %91 = arith.truncf %90 : vector<16x128xf32> to vector<16x128xbf16>
    %c0_48 = arith.constant 0 : index
    %c0_49 = arith.constant 0 : index
    %92 = vector.load %arg13[%c0_48, %c0_49] : memref<128x128xbf16, #tpu.memory_space<vmem>>, vector<128x128xbf16>
    %cst_50 = arith.constant dense<0.000000e+00> : vector<16x128xf32>
    %93 = tpu.matmul %91, %92, %cst_50 {dimension_numbers = #tpu.dot_dimension_numbers<[1], [0], [0], [1], [0, 0, 1, 1], [], []>} : vector<16x128xbf16>, vector<128x128xbf16>, vector<16x128xf32> -> vector<16x128xf32>
    %c0_51 = arith.constant 0 : index
    %c0_52 = arith.constant 0 : index
    %94 = vector.load %arg14[%c0_51, %c0_52] : memref<1x128xf32, #tpu.memory_space<vmem>>, vector<1x128xf32>
    %95 = vector.broadcast %94 : vector<1x128xf32> to vector<16x128xf32>
    %96 = arith.addf %93, %95 : vector<16x128xf32>
    %cst_53 = arith.constant 0.000000e+00 : f32
    %97 = vector.broadcast %cst_53 : f32 to vector<16x128xf32>
    %98 = arith.cmpf oge, %96, %97 : vector<16x128xf32>
    %cst_54 = arith.constant 2.000000e-01 : f32
    %99 = vector.broadcast %cst_54 : f32 to vector<16x128xf32>
    %100 = arith.mulf %99, %96 : vector<16x128xf32>
    %101 = arith.select %98, %96, %100 : vector<16x128xi1>, vector<16x128xf32>
    %102 = arith.truncf %101 : vector<16x128xf32> to vector<16x128xbf16>
    %c0_55 = arith.constant 0 : index
    %c0_56 = arith.constant 0 : index
    %103 = vector.load %arg15[%c0_55, %c0_56] : memref<128x128xbf16, #tpu.memory_space<vmem>>, vector<128x128xbf16>
    %cst_57 = arith.constant dense<0.000000e+00> : vector<16x128xf32>
    %104 = tpu.matmul %102, %103, %cst_57 {dimension_numbers = #tpu.dot_dimension_numbers<[1], [0], [0], [1], [0, 0, 1, 1], [], []>} : vector<16x128xbf16>, vector<128x128xbf16>, vector<16x128xf32> -> vector<16x128xf32>
    %c0_58 = arith.constant 0 : index
    %c0_59 = arith.constant 0 : index
    %105 = vector.load %arg16[%c0_58, %c0_59] : memref<1x128xf32, #tpu.memory_space<vmem>>, vector<1x128xf32>
    %106 = vector.broadcast %105 : vector<1x128xf32> to vector<16x128xf32>
    %107 = arith.addf %104, %106 : vector<16x128xf32>
    %c0_60 = arith.constant 0 : index
    %c0_61 = arith.constant 0 : index
    %108 = vector.load %arg19[%c0_60, %c0_61] : memref<1x128xf32, #tpu.memory_space<vmem>>, vector<1x128xf32>
    %c0_62 = arith.constant 0 : index
    %c0_63 = arith.constant 0 : index
    %109 = vector.load %arg20[%c0_62, %c0_63] : memref<1x128xf32, #tpu.memory_space<vmem>>, vector<1x128xf32>
    %cst_64 = arith.constant dense<0.000000e+00> : vector<128xf32>
    %110 = vector.multi_reduction <add>, %107, %cst_64 [0] : vector<16x128xf32> to vector<128xf32>
    %111 = vector.shape_cast %110 : vector<128xf32> to vector<1x128xf32>
    %cst_65 = arith.constant 1.600000e+01 : f32
    %112 = vector.broadcast %cst_65 : f32 to vector<1x128xf32>
    %113 = arith.divf %111, %112 : vector<1x128xf32>
    %114 = vector.broadcast %113 : vector<1x128xf32> to vector<16x128xf32>
    %115 = arith.subf %107, %114 : vector<16x128xf32>
    %116 = arith.mulf %115, %115 : vector<16x128xf32>
    %cst_66 = arith.constant dense<0.000000e+00> : vector<128xf32>
    %117 = vector.multi_reduction <add>, %116, %cst_66 [0] : vector<16x128xf32> to vector<128xf32>
    %118 = vector.shape_cast %117 : vector<128xf32> to vector<1x128xf32>
    %cst_67 = arith.constant 1.600000e+01 : f32
    %119 = vector.broadcast %cst_67 : f32 to vector<1x128xf32>
    %120 = arith.divf %118, %119 : vector<1x128xf32>
    %121 = vector.broadcast %113 : vector<1x128xf32> to vector<16x128xf32>
    %122 = arith.subf %107, %121 : vector<16x128xf32>
    %cst_68 = arith.constant 9.99999974E-6 : f32
    %123 = vector.broadcast %cst_68 : f32 to vector<1x128xf32>
    %124 = arith.addf %120, %123 : vector<1x128xf32>
    %125 = math.rsqrt %124 : vector<1x128xf32>
    %126 = vector.broadcast %125 : vector<1x128xf32> to vector<16x128xf32>
    %127 = arith.mulf %122, %126 : vector<16x128xf32>
    %128 = vector.broadcast %108 : vector<1x128xf32> to vector<16x128xf32>
    %129 = arith.mulf %127, %128 : vector<16x128xf32>
    %130 = vector.broadcast %109 : vector<1x128xf32> to vector<16x128xf32>
    %131 = arith.addf %129, %130 : vector<16x128xf32>
    %132 = arith.addf %0, %131 : vector<16x128xf32>
    %c0_69 = arith.constant 0 : index
    %c0_70 = arith.constant 0 : index
    %133 = vector.load %arg21[%c0_69, %c0_70] : memref<16x128xf32, #tpu.memory_space<vmem>>, vector<16x128xf32>
    tpu.vector_store %arg21[%c0_69, %c0_70], %132 {strides = array<i32>} : memref<16x128xf32, #tpu.memory_space<vmem>>, vector<16x128xf32>,
    return
  }
}

</mosaic_0001>

<bundles_post_ra>
// kernel: tpu_custom_call.1
= control target key start
LH: loop header
LB: loop body
LE: loop exit
PB: predicated region body
PF: predicated region fallthrough
CT: control target
= control target key end

     0   :  { %s2934_s0 = inlined_call_operand.vmem [shape: f32[16,128], index: 0, kind: input, shape index: {}]   ;;  %s2935_s1 = inlined_call_operand.hbm [shape: f32[64,128], index: 1, kind: input, shape index: {}]   ;;  %s2936_s2 = inlined_call_operand.vmem [shape: s32[64,1], index: 2, kind: input, shape index: {}]   ;;  %s2937_s3 = inlined_call_operand.vmem [shape: s32[64,1], index: 3, kind: input, shape index: {}]   ;;  %s2938_s4 = inlined_call_operand.vmem [shape: f32[16,1], index: 4, kind: input, shape index: {}]   ;;  %s2939_s5 = inlined_call_operand.hbm [shape: bf16[384,128], index: 5, kind: input, shape index: {}]   ;;  %s2940_s6 = inlined_call_operand.vmem [shape: f32[1,128], index: 6, kind: input, shape index: {}]   ;;  %s2941_s7 = inlined_call_operand.hbm [shape: bf16[128,128], index: 7, kind: input, shape index: {}]   ;;  %s2942_s8 = inlined_call_operand.vmem [shape: f32[1,128], index: 8, kind: input, shape index: {}]   ;;  %s2943_s9 = inlined_call_operand.hbm [shape: bf16[128,128], index: 9, kind: input, shape index: {}]   ;;  %s2944_s10 = inlined_call_operand.vmem [shape: f32[1,128], index: 10, kind: input, shape index: {}]   ;;  %s2945_s11 = inlined_call_operand.vmem [shape: bf16[256,128], index: 11, kind: input, shape index: {}]   ;;  %s2946_s12 = inlined_call_operand.vmem [shape: f32[1,128], index: 12, kind: input, shape index: {}]   ;;  %s2947_s13 = inlined_call_operand.hbm [shape: bf16[128,128], index: 13, kind: input, shape index: {}]   ;;  %s2948_s14 = inlined_call_operand.vmem [shape: f32[1,128], index: 14, kind: input, shape index: {}]   ;;  %s2949_s15 = inlined_call_operand.hbm [shape: bf16[128,128], index: 15, kind: input, shape index: {}]   ;;  %s2950_s16 = inlined_call_operand.vmem [shape: f32[1,128], index: 16, kind: input, shape index: {}]   ;;  %s2951_s17 = inlined_call_operand.vmem [shape: f32[1,128], index: 17, kind: input, shape index: {}]   ;;  %s2952_s18 = inlined_call_operand.vmem [shape: f32[1,128], index: 18, kind: input, shape index: {}]   ;;  %s2953_s19 = inlined_call_operand.vmem [shape: f32[1,128], index: 19, kind: input, shape index: {}]   ;;  %s2954_s20 = inlined_call_operand.vmem [shape: f32[1,128], index: 20, kind: input, shape index: {}]   ;;  %s2955_s21 = inlined_call_operand.hbm [shape: f32[16,128], index: 21, kind: output, shape index: {0}]   ;;  %s2956_s22 = inlined_call_operand.hbm [shape: f32[64,128], index: 22, kind: output, shape index: {1}]  }
   0x1   :  { %2961 = sst [smem:[#allocation22_spill]] %s2934_s0 }
   0x2   :  { %2962 = sst [smem:[#allocation23_spill]] %s2935_s1 }
   0x3   :  { %2963 = sst [smem:[#allocation24_spill]] %s2936_s2 }
   0x4   :  { %2964 = sst [smem:[#allocation25_spill]] %s2937_s3 }
   0x5   :  { %2965 = sst [smem:[#allocation26_spill]] %s2938_s4 }
   0x6   :  { %2966 = sst [smem:[#allocation27_spill]] %s2939_s5 }
   0x7   :  { %2967 = sst [smem:[#allocation28_spill]] %s2940_s6 }
   0x8   :  { %28 = vsyncpa [#allocation3], 0 }
   0x9   :  { %29 = vsyncpa [#allocation6], 0 }
   0xa   :  { %30 = vsyncpa [#allocation9], 0 }
   0xb   :  { %31 = vsyncpa [#allocation12], 0 }
   0xc   :  { %32 = vsyncpa [#allocation4], 0 }
   0xd   :  { %33 = vsyncpa [#allocation15], 0  ;;  %s2501_s3 = smov [#allocation5]  }
   0xe   :  { %s59_s28 = sshll.u32 %s2501_s3, 4  ;;  %s60_s28 = int_to_ptr.vmem [resolvable:$true] %s59_s28 }
   0xf   :  { %s2337_s29 = scalar_lea.vmem %s60_s28, 3072  ;;  %p2342_p1 = scmp.lt.s32.totalorder %s60_s28, %s60_s28 }
  0x10   :  { %p2338_p0 = scmp.ne.s32.totalorder %s60_s28, %s2337_s29  ;;  %p2343_p2 = scmp.lt.s32.totalorder %s2337_s29, %s2337_s29 }
  0x12   :  { %p2344_p3 = por %p2343_p2, %p2342_p1 }
  0x14   :  { %p2345_p4 = pnand %p2344_p3, %p2338_p0 }
  0x16   :  { %2348 = shalt.err (!%p2345_p4)
}
  0x17   :  { %s2502_s30 = smov 64   ;;  %s2503_s4 = smov 4  }
  0x18   :  { %s2968_s1 = sld [smem:[#allocation27_spill]]  ;;  %s2504_s5 = smov [#allocation8]  }
  0x19   :  { %s87_s24 = sshll.u32 %s2504_s5, 4  ;;  %s2505_s6 = smov [#allocation2]   ;;  %s88_s24 = int_to_ptr.vmem [resolvable:$true] %s87_s24 }
  0x1a   :  { %s41_s25 = sshll.u32 %s2505_s6, 4  ;;  %s2357_s26 = scalar_lea.vmem %s88_s24, 1024  ;;  %s42_s25 = int_to_ptr.vmem [resolvable:$true] %s41_s25 }
  0x1b   :  { %p2358_p5 = scmp.ne.s32.totalorder %s88_s24, %s2357_s26  ;;  %p2362_p6 = scmp.lt.s32.totalorder %s88_s24, %s88_s24 }
  0x1c   :  { %p2363_p7 = scmp.lt.s32.totalorder %s2357_s26, %s2357_s26 }
  0x1e   :  { %65 = dma.hbm_to_vmem [thread:$0]  %s2968_s1, 3072, %s60_s28, [#allocation6], %s2502_s30, %s2502_s30, %s2503_s4  }
  0x1f   :  { %p2364_p8 = por %p2363_p7, %p2362_p6 }
  0x21   :  { %p2365_p9 = pnand %p2364_p8, %p2358_p5 }
  0x23   :  { %2368 = shalt.err (!%p2365_p9)
}
  0x24   :  { %93 = dma.hbm_to_vmem [thread:$0]  %s2943_s9, 1024, %s88_s24, [#allocation9], %s2502_s30, %s2502_s30, %s2503_s4  }
  0x25   :  { %s2377_s3 = scalar_lea.vmem %s42_s25, 1024  ;;  %p2382_p11 = scmp.lt.s32.totalorder %s42_s25, %s42_s25 }
  0x26   :  { %p2378_p10 = scmp.ne.s32.totalorder %s42_s25, %s2377_s3  ;;  %p2383_p12 = scmp.lt.s32.totalorder %s2377_s3, %s2377_s3 }
  0x28   :  { %p2384_p13 = por %p2383_p12, %p2382_p11 }
  0x2a   :  { %p2385_p0 = pnand %p2384_p13, %p2378_p10 }
  0x2c   :  { %2388 = shalt.err (!%p2385_p0)
}
  0x2d   :  { %s2506_s28 = smov 128   ;;  %s2507_s29 = smov 8  }
  0x2e   :  { %s2969_s1 = sld [smem:[#allocation23_spill]]  ;;  %s2508_s5 = smov [#allocation7]  }
  0x2f   :  { %s73_s6 = sshll.u32 %s2508_s5, 4  ;;  %s2509_s9 = smov [#allocation10]   ;;  %s74_s6 = int_to_ptr.vmem [resolvable:$true] %s73_s6 }
  0x30   :  { %s105_s24 = sshll.u32 %s2509_s9, 4  ;;  %s2397_s26 = scalar_lea.vmem %s74_s6, 1024  ;;  %s106_s24 = int_to_ptr.vmem [resolvable:$true] %s105_s24 }
  0x31   :  { %p2398_p1 = scmp.ne.s32.totalorder %s74_s6, %s2397_s26  ;;  %p2402_p2 = scmp.lt.s32.totalorder %s74_s6, %s74_s6 }
  0x32   :  { %p2403_p3 = scmp.lt.s32.totalorder %s2397_s26, %s2397_s26 }
  0x34   :  { %47 = dma.hbm_to_vmem [thread:$0]  %s2969_s1, 1024, %s42_s25, [#allocation3], %s2506_s28, %s2506_s28, %s2507_s29  }
  0x35   :  { %p2404_p4 = por %p2403_p3, %p2402_p2 }
  0x37   :  { %p2405_p5 = pnand %p2404_p4, %p2398_p1 }
  0x39   :  { %2408 = shalt.err (!%p2405_p5)
}
  0x3a   :  { %79 = dma.hbm_to_vmem [thread:$0]  %s2941_s7, 1024, %s74_s6, [#allocation6], %s2502_s30, %s2502_s30, %s2503_s4  }
  0x3b   :  { %s2417_s25 = scalar_lea.vmem %s106_s24, 1024  ;;  %p2422_p7 = scmp.lt.s32.totalorder %s106_s24, %s106_s24 }
  0x3c   :  { %p2418_p6 = scmp.ne.s32.totalorder %s106_s24, %s2417_s25  ;;  %p2423_p8 = scmp.lt.s32.totalorder %s2417_s25, %s2417_s25 }
  0x3e   :  { %p2424_p9 = por %p2423_p8, %p2422_p7 }
  0x40   :  { %p2425_p10 = pnand %p2424_p9, %p2418_p6 }
  0x42   :  { %2428 = shalt.err (!%p2425_p10)
}
  0x43   :  { %111 = dma.hbm_to_vmem [thread:$0]  %s2947_s13, 1024, %s106_s24, [#allocation9], %s2502_s30, %s2502_s30, %s2503_s4  }
  0x44   :  { %s2510_s23 = smov [#allocation11]  }
  0x45   :  { %s119_s1 = sshll.u32 %s2510_s23, 4  ;;  %s120_s1 = int_to_ptr.vmem [resolvable:$true] %s119_s1 }
  0x46   :  { %s2437_s5 = scalar_lea.vmem %s120_s1, 1024  ;;  %p2442_p12 = scmp.lt.s32.totalorder %s120_s1, %s120_s1 }
  0x47   :  { %p2438_p11 = scmp.ne.s32.totalorder %s120_s1, %s2437_s5  ;;  %p2443_p13 = scmp.lt.s32.totalorder %s2437_s5, %s2437_s5 }
  0x49   :  { %p2444_p0 = por %p2443_p13, %p2442_p12 }
  0x4b   :  { %p2445_p1 = pnand %p2444_p0, %p2438_p11 }
  0x4d   :  { %2448 = shalt.err (!%p2445_p1)
}
  0x4e   :  { %125 = dma.hbm_to_vmem [thread:$0]  %s2949_s15, 1024, %s120_s1, [#allocation12], %s2502_s30, %s2502_s30, %s2503_s4  }
  0x4f   :  { %2489 = dma.done.wait [#allocation3], 1024  }
  0x50   :  { %2490 = vsyncadd [#allocation3], 4294966272 }
  0x51   :  { %2491 = dma.done.wait [#allocation6], 4096  }
  0x52   :  { %2492 = vsyncadd [#allocation6], 4294963200 }
  0x53   :  { %2493 = dma.done.wait [#allocation9], 2048  }
  0x54   :  { %2494 = vsyncadd [#allocation9], 4294965248 }
  0x55   :  { %2495 = dma.done.wait [#allocation12], 1024  }
  0x56   :  { %2496 = vsyncadd [#allocation12], 4294966272  ;;  %v2511_v0 = vmov 0   ;;  %s2970_s24 = sld [smem:[#allocation25_spill]]  ;;  %v2251_v21 = vld [vmem:[#allocation5 + $0x78] sm:$0xff]   ;;  %v186_v24 = vlaneseq  ;;  %v2512_v28 = vmov 0.0  }
  0x57   :  { %2250 = vset.pattern.permute.xlu1 %v2511_v0  ;;  %2249 = vset.pattern.permute.xlu0 %v2511_v0  ;;  %s2971_s27 = sld [smem:[#allocation24_spill]]  ;;  %v2254_v22 = vld [vmem:[#allocation5 + $0xb8] sm:$0xff]   ;;  %vm292_vm4 = vcmask 130048   ;;  %v2257_v42 = vld [vmem:[#allocation5 + $0xb0] sm:$0xff]   ;;  %v2260_v52 = vld [vmem:[#allocation5 + $0xa8] sm:$0xff]   ;;  %s2514_s15 = smov [#allocation14]  }
  0x58   :  { %s2972_s6 = sld [smem:[#allocation22_spill]]  ;;  %v2733_v25 = vand.u32 127, %v186_v24  ;;  %v2252_v47 = vld [vmem:[#allocation5 + $0x38] sm:$0xff]   ;;  %v2253_v49 = vld [vmem:[#allocation5 + $0x70] sm:$0xff]   ;;  %v2256_v57 = vld [vmem:[#allocation5 + $0x68] sm:$0xff]   ;;  %s1820_s30 = sshll.u32 %s2514_s15, 4  ;;  %s1821_s30 = int_to_ptr.vmem [resolvable:$true] %s1820_s30 }
  0x59   :  { %s2973_s23 = sld [smem:[#allocation26_spill]]  ;;  %v2255_v55 = vld [vmem:[#allocation5 + $0x30] sm:$0xff]   ;;  %v2263_v60 = vld [vmem:[#allocation5 + $0xa0] sm:$0xff]   ;;  %v2258_v63 = vld [vmem:[#allocation5 + $0x28] sm:$0xff]   ;;  %s2449_s4 = scalar_lea.vmem %s1821_s30, 1024 }
  0x5a   :  { %v2273_v24 = vld [vmem:[#allocation5] sm:$0xff]   ;;  %s2974_s7 = sld [smem:[#allocation28_spill]]  ;;  %p2450_p2 = scmp.ne.s32.totalorder %s1821_s30, %s2449_s4 }
  0x5b   :  { %p2454_p3 = scmp.lt.s32.totalorder %s1821_s30, %s1821_s30  ;;  %p2455_p4 = scmp.lt.s32.totalorder %s2449_s4, %s2449_s4 }
  0x5c   :  { %v178_v1 = vld [vmem:[%s2970_s24] sm:$0xff]  ;;  %v179_v3 = vld [vmem:[%s2970_s24 + $0x8] sm:$0xff]  ;;  %v180_v5 = vld [vmem:[%s2970_s24 + $0x10] sm:$0xff] }
  0x5d   :  { %v170_v2 = vld [vmem:[%s2971_s27] sm:$0xff]  ;;  %237 = vperm.xlu0 %2249, %v178_v1   ;;  %v171_v4 = vld [vmem:[%s2971_s27 + $0x8] sm:$0xff]  ;;  %v181_v6 = vld [vmem:[%s2970_s24 + $0x18] sm:$0xff]  ;;  %p2456_p5 = por %p2455_p4, %p2454_p3 }
  0x5e   :  { %189 = vperm.xlu1 %2250, %v170_v2   ;;  %v155_v7 = vld [vmem:[%s2972_s6] sm:$0xff]  ;;  %v156_v8 = vld [vmem:[%s2972_s6 + $0x8] sm:$0xff]  ;;  %v172_v10 = vld [vmem:[%s2971_s27 + $0x10] sm:$0xff] }
  0x5f   :  { %v2691_v9 = vpack.c.bf16 %v156_v8, %v155_v7  ;;  %v173_v11 = vld [vmem:[%s2971_s27 + $0x18] sm:$0xff]  ;;  %v182_v12 = vld [vmem:[%s2970_s24 + $0x20] sm:$0xff]  ;;  %v183_v13 = vld [vmem:[%s2970_s24 + $0x28] sm:$0xff]  ;;  %p2457_p6 = pnand %p2456_p5, %p2450_p2 }
  0x60   :  { %v174_v14 = vld [vmem:[%s2971_s27 + $0x20] sm:$0xff]  ;;  %v175_v15 = vld [vmem:[%s2971_s27 + $0x28] sm:$0xff]  ;;  %v184_v16 = vld [vmem:[%s2970_s24 + $0x30] sm:$0xff] }
  0x61   :  { %240 = vperm.xlu0 %2249, %v179_v3   ;;  %2093 = vmatprep.subr.bf16.mxu1 %v2691_v9  ;;  %v185_v17 = vld [vmem:[%s2970_s24 + $0x38] sm:$0xff]  ;;  %v176_v18 = vld [vmem:[%s2971_s27 + $0x30] sm:$0xff]  ;;  %v1327_v20 = vld [vmem:[%s2973_s23] sm:$0xff] }
  0x62   :  { %192 = vperm.xlu1 %2250, %v171_v4   ;;  %2083 = vmatprep.subr.bf16.mxu0 %v2691_v9  ;;  %v177_v19 = vld [vmem:[%s2971_s27 + $0x38] sm:$0xff]  ;;  %v1328_v23 = vld [vmem:[%s2973_s23 + $0x8] sm:$0xff]  ;;  %v2259_v1 = vld [vmem:[#allocation5 + $0x60] sm:$0xff]  }
  0x63   :  { %2094 = vmatpush3.bf16.msra.mxu1 %v2691_v9  ;;  %2084 = vmatpush3.bf16.msra.mxu0 %v2691_v9  ;;  %v2262_v8 = vld [vmem:[#allocation5 + $0x58] sm:$0xff]  }
  0x64   :  { %1957 = vmatprep.subr.bf16.mxu0 %v2251_v21  ;;  %2103 = vmatprep.subr.bf16.mxu1 %v2254_v22  ;;  %v2270_v21 = vld [vmem:[#allocation5 + $0x8] sm:$0xff]  }
  0x65   :  { %243 = vperm.xlu0 %2249, %v180_v5  }
  0x66   :  { %246 = vperm.xlu1 %2250, %v181_v6   ;;  %v2261_v6 = vld [vmem:[#allocation5 + $0x20] sm:$0xff]  }
  0x69   :  { %195 = vperm.xlu0 %2249, %v172_v10  }
  0x6a   :  { %198 = vperm.xlu1 %2250, %v173_v11  }
  0x6d   :  { %249 = vperm.xlu0 %2249, %v182_v12  }
  0x6e   :  { %252 = vperm.xlu1 %2250, %v183_v13  }
  0x71   :  { %201 = vperm.xlu0 %2249, %v174_v14   ;;  %v2264_v14 = vld [vmem:[#allocation5 + $0x18] sm:$0xff]  }
  0x72   :  { %204 = vperm.xlu1 %2250, %v175_v15  }
  0x75   :  { %255 = vperm.xlu0 %2249, %v184_v16   ;;  %v2265_v16 = vld [vmem:[#allocation5 + $0x50] sm:$0xff]  }
  0x76   :  { %258 = vperm.xlu1 %2250, %v185_v17   ;;  %v2266_v17 = vld [vmem:[#allocation5 + $0x98] sm:$0xff]  }
  0x79   :  { %207 = vperm.xlu0 %2249, %v176_v18   ;;  %v2267_v18 = vld [vmem:[#allocation5 + $0x10] sm:$0xff]  }
  0x7a   :  { %210 = vperm.xlu1 %2250, %v177_v19   ;;  %v2268_v19 = vld [vmem:[#allocation5 + $0x48] sm:$0xff]  }
  0x7e   :  { %1331 = vperm.xlu1 %2250, %v1327_v20   ;;  %v2269_v20 = vld [vmem:[#allocation5 + $0x90] sm:$0xff]  }
  0x82   :  { %1336 = vperm.xlu1 %2250, %v1328_v23   ;;  %v2272_v23 = vld [vmem:[#allocation5 + $0x88] sm:$0xff]  }
  0xd8   :  { %v238_v26 = vpop.permute.xlu0 %237 }
  0xd9   :  { %v190_v27 = vpop.permute.xlu1 %189  ;;  %vm260_vm1 = vcmp.eq.s32.totalorder %v2733_v25, %v238_v26  ;;  %v2775_v26 = vld [vmem:[#allocation2] sm:$0xff] }
  0xda   :  { %vm212_vm0 = vcmp.eq.s32.totalorder %v2733_v25, %v190_v27  ;;  %v1847_v32 = vsel %vm260_vm1, 1.0, %v2512_v28  ;;  %v2777_v27 = vld [vmem:[#allocation2 + $0x8] sm:$0xff] }
  0xdb   :  { %v1839_v29 = vsel %vm212_vm0, 1.0, %v2512_v28 }
  0xdc   :  { %1213 = vxpose.xlu0.b32.start [1/8] (short) (narrow) %v1839_v29, 16  ;;  %v241_v30 = vpop.permute.xlu0 %240 }
  0xdd   :  { %v193_v31 = vpop.permute.xlu1 %192  ;;  %vm261_vm2 = vcmp.eq.s32.totalorder %v2733_v25, %v241_v30  ;;  %v2781_v30 = vld [vmem:[#allocation2 + $0x10] sm:$0xff] }
  0xde   :  { %vm213_vm3 = vcmp.eq.s32.totalorder %v2733_v25, %v193_v31  ;;  %v1848_v33 = vsel %vm261_vm2, 1.0, %v2512_v28  ;;  %v2783_v31 = vld [vmem:[#allocation2 + $0x18] sm:$0xff] }
  0xdf   :  { %v1840_v34 = vsel %vm213_vm3, 1.0, %v2512_v28  ;;  %v284_v36 = vpack.c.bf16 %v1848_v33, %v1847_v32  ;;  %v167_v32 = vpack.c.bf16 %v2783_v31, %v2781_v30  ;;  %v2787_v33 = vld [vmem:[#allocation2 + $0x20] sm:$0xff] }
  0xe0   :  { %1214 = vxpose.xlu0.b32.cont [2/8] (short) (narrow) %v1840_v34, 16  ;;  %v288_v35 = vpack.c.bf16 %v1840_v34, %v1839_v29  ;;  %v244_v37 = vpop.permute.xlu0 %243  ;;  %v166_v29 = vpack.c.bf16 %v2777_v27, %v2775_v26  ;;  %v2789_v34 = vld [vmem:[#allocation2 + $0x28] sm:$0xff] }
  0xe1   :  { %v247_v38 = vpop.permute.xlu1 %246  ;;  %vm262_vm5 = vcmp.eq.s32.totalorder %v2733_v25, %v244_v37  ;;  %2095 = vmatprep.mubr.msk.bf16.mxu1 %vm292_vm4, %v284_v36  ;;  %v2793_v36 = vld [vmem:[#allocation2 + $0x30] sm:$0xff]  ;;  %v2795_v37 = vld [vmem:[#allocation2 + $0x38] sm:$0xff] }
  0xe2   :  { %vm263_vm6 = vcmp.eq.s32.totalorder %v2733_v25, %v247_v38  ;;  %2085 = vmatprep.mubr.msk.bf16.mxu0 %vm292_vm4, %v288_v35  ;;  %v1849_v39 = vsel %vm262_vm5, 1.0, %v2512_v28  ;;  %v168_v35 = vpack.c.bf16 %v2789_v34, %v2787_v33  ;;  %v169_v38 = vpack.c.bf16 %v2795_v37, %v2793_v36 }
  0xe3   :  { %v1850_v40 = vsel %vm263_vm6, 1.0, %v2512_v28 }
  0xe4   :  { %v285_v41 = vpack.c.bf16 %v1850_v40, %v1849_v39  ;;  %v196_v43 = vpop.permute.xlu0 %195  ;;  %v2275_v39 = vld [vmem:[#allocation7 + $0x38] sm:$0xff]  }
  0xe5   :  { %v199_v44 = vpop.permute.xlu1 %198  ;;  %vm214_vm7 = vcmp.eq.s32.totalorder %v2733_v25, %v196_v43 }
  0xe6   :  { %vm215_vm8 = vcmp.eq.s32.totalorder %v2733_v25, %v199_v44  ;;  %2096 = vmatmul.mubr.msk.bf16.vlgmr.msra.gmra.mxu1 %vm292_vm4, %v285_v41  ;;  %v1841_v45 = vsel %vm214_vm7, 1.0, %v2512_v28 }
  0xe7   :  { %v1842_v46 = vsel %vm215_vm8, 1.0, %v2512_v28  ;;  %2104 = vmatpush3.bf16.msra.mxu1 %v2254_v22  ;;  %1215 = vxpose.xlu0.b32.cont [3/8] (short) (narrow) %v1841_v45, 16  ;;  %v2271_v22 = vld [vmem:[#allocation5 + $0x40] sm:$0xff]  }
  0xe8   :  { %v289_v48 = vpack.c.bf16 %v1842_v46, %v1841_v45  ;;  %2105 = vmatprep.subr.bf16.mxu1 %v2257_v42  ;;  %v250_v50 = vpop.permute.xlu0 %249 }
  0xe9   :  { %v253_v51 = vpop.permute.xlu1 %252  ;;  %vm264_vm9 = vcmp.eq.s32.totalorder %v2733_v25, %v250_v50  ;;  %v2276_v50 = vld [vmem:[#allocation7 + $0x30] sm:$0xff]  }
  0xea   :  { %vm265_vm10 = vcmp.eq.s32.totalorder %v2733_v25, %v253_v51  ;;  %2086 = vmatmul.mubr.msk.bf16.vlgmr.msra.gmra.mxu0 %vm292_vm4, %v289_v48  ;;  %v1851_v53 = vsel %vm264_vm9, 1.0, %v2512_v28 }
  0xeb   :  { %v1852_v54 = vsel %vm265_vm10, 1.0, %v2512_v28  ;;  %1958 = vmatpush3.bf16.msra.mxu0 %v2252_v47  ;;  %2106 = vmatpush3.bf16.msra.mxu1 %v2257_v42 }
  0xec   :  { %v286_v56 = vpack.c.bf16 %v1852_v54, %v1851_v53  ;;  %1216 = vxpose.xlu0.b32.cont [4/8] (short) (narrow) %v1842_v46, 16  ;;  %1959 = vmatprep.subr.bf16.mxu0 %v2253_v49  ;;  %v202_v58 = vpop.permute.xlu0 %201 }
  0xed   :  { %v205_v59 = vpop.permute.xlu1 %204  ;;  %2107 = vmatprep.subr.bf16.mxu1 %v2260_v52  ;;  %vm216_vm11 = vcmp.eq.s32.totalorder %v2733_v25, %v202_v58 }
  0xee   :  { %vm217_vm12 = vcmp.eq.s32.totalorder %v2733_v25, %v205_v59  ;;  %2099 = vmatprep.mubr.msk.bf16.mxu1 %vm292_vm4, %v286_v56  ;;  %v1843_v61 = vsel %vm216_vm11, 1.0, %v2512_v28 }
  0xef   :  { %v1844_v62 = vsel %vm217_vm12, 1.0, %v2512_v28  ;;  %1960 = vmatpush3.bf16.msra.mxu0 %v2255_v55  ;;  %2108 = vmatpush3.bf16.msra.mxu1 %v2260_v52 }
  0xf0   :  { %v290_v0 = vpack.c.bf16 %v1844_v62, %v1843_v61  ;;  %1217 = vxpose.xlu0.b32.cont [5/8] (short) (narrow) %v1843_v61, 16  ;;  %1961 = vmatprep.subr.bf16.mxu0 %v2256_v57  ;;  %v256_v2 = vpop.permute.xlu0 %255 }
  0xf1   :  { %v259_v3 = vpop.permute.xlu1 %258  ;;  %2109 = vmatprep.subr.bf16.mxu1 %v2263_v60  ;;  %vm266_vm13 = vcmp.eq.s32.totalorder %v2733_v25, %v256_v2  ;;  %v2278_v2 = vld [vmem:[#allocation7 + $0x20] sm:$0xff]  }
  0xf2   :  { %vm267_vm14 = vcmp.eq.s32.totalorder %v2733_v25, %v259_v3  ;;  %2089 = vmatprep.mubr.msk.bf16.mxu0 %vm292_vm4, %v290_v0  ;;  %v1853_v4 = vsel %vm266_vm13, 1.0, %v2512_v28  ;;  %v2279_v3 = vld [vmem:[#allocation7 + $0x18] sm:$0xff]  }
  0xf3   :  { %v1854_v5 = vsel %vm267_vm14, 1.0, %v2512_v28  ;;  %1962 = vmatpush3.bf16.msra.mxu0 %v2258_v63  ;;  %2110 = vmatpush3.bf16.msra.mxu1 %v2263_v60 }
  0xf4   :  { %v287_v7 = vpack.c.bf16 %v1854_v5, %v1853_v4  ;;  %1218 = vxpose.xlu0.b32.cont [6/8] (short) (narrow) %v1844_v62, 16  ;;  %1963 = vmatprep.subr.bf16.mxu0 %v2259_v1  ;;  %v208_v10 = vpop.permute.xlu0 %207  ;;  %v2277_v1 = vld [vmem:[#allocation7 + $0x28] sm:$0xff]   ;;  %v2280_v4 = vld [vmem:[#allocation7 + $0x10] sm:$0xff]  }
  0xf5   :  { %v211_v11 = vpop.permute.xlu1 %210  ;;  %vm218_vm15 = vcmp.eq.s32.totalorder %v2733_v25, %v208_v10  ;;  %2111 = vmatprep.subr.bf16.mxu1 %v2266_v17  ;;  %v2281_v5 = vld [vmem:[#allocation7 + $0x8] sm:$0xff]  }
  0xf6   :  { %vm219_vm0 = vcmp.eq.s32.totalorder %v2733_v25, %v211_v11  ;;  %2100 = vmatmul.mubr.msk.bf16.gmra.mxu1 %vm292_vm4, %v287_v7  ;;  %v1845_v12 = vsel %vm218_vm15, 1.0, %v2512_v28  ;;  %v2274_v25 = vld [vmem:[#allocation5 + $0x80] sm:$0xff]   ;;  %v2283_v7 = vld [vmem:[#allocation8 + $0x38] sm:$0xff]   ;;  %v2285_v10 = vld [vmem:[#allocation8 + $0x28] sm:$0xff]  }
  0xf7   :  { %v1846_v13 = vsel %vm219_vm0, 1.0, %v2512_v28  ;;  %1964 = vmatpush3.bf16.msra.mxu0 %v2261_v6  ;;  %2112 = vmatpush3.bf16.msra.mxu1 %v2266_v17  ;;  %v2282_v6 = vld [vmem:[#allocation7] sm:$0xff]  }
  0xf8   :  { %v291_v15 = vpack.c.bf16 %v1846_v13, %v1845_v12  ;;  %1219 = vxpose.xlu0.b32.cont [7/8] (short) (narrow) %v1845_v12, 16  ;;  %1965 = vmatprep.subr.bf16.mxu0 %v2262_v8  ;;  %v2284_v8 = vld [vmem:[#allocation8 + $0x30] sm:$0xff]   ;;  %v2286_v11 = vld [vmem:[#allocation8 + $0x20] sm:$0xff]   ;;  %v2287_v12 = vld [vmem:[#allocation8 + $0x18] sm:$0xff]  }
  0xf9   :  { %2113 = vmatprep.subr.bf16.mxu1 %v2269_v20  ;;  %2119 = vmatprep.mubr.bf16.mxu1 %v166_v29  ;;  %v2802_v17 = vld [vmem:[%s2974_s7] ss:$0 sm:$0xff] }
  0xfa   :  { %2090 = vmatmul.mubr.msk.bf16.gmra.mxu0 %vm292_vm4, %v291_v15 }
  0xfb   :  { %1966 = vmatpush3.bf16.msra.mxu0 %v2264_v14  ;;  %2114 = vmatpush3.bf16.msra.mxu1 %v2269_v20 }
  0xfc   :  { %1220 = vxpose.xlu0.b32.end [8/8] (short) (narrow) %v1846_v13, 16  ;;  %1967 = vmatprep.subr.bf16.mxu0 %v2265_v16 }
  0xfd   :  { %2115 = vmatprep.subr.bf16.mxu1 %v2272_v23 }
  0xff   :  { %1968 = vmatpush3.bf16.msra.mxu0 %v2267_v18  ;;  %2116 = vmatpush3.bf16.msra.mxu1 %v2272_v23 }
 0x100   :  { %1969 = vmatprep.subr.bf16.mxu0 %v2268_v19  ;;  %2117 = vmatprep.subr.bf16.mxu1 %v2274_v25 }
 0x103   :  { %1970 = vmatpush3.bf16.msra.mxu0 %v2270_v21  ;;  %2118 = vmatpush3.bf16.msra.mxu1 %v2274_v25 }
 0x104   :  { %1971 = vmatprep.subr.bf16.mxu0 %v2271_v22  ;;  %2151 = vmatprep.subr.bf16.mxu1 %v2283_v7 }
 0x106   :  { %2120 = vmatmul.mubr.bf16.vlgmr.msra.gmra.mxu1 %v167_v32 }
 0x107   :  { %1972 = vmatpush3.bf16.msra.mxu0 %v2273_v24  ;;  %2123 = vmatprep.mubr.bf16.mxu1 %v168_v35 }
 0x108   :  { %2127 = vmatprep.subr.bf16.mxu0 %v2275_v39  ;;  %2152 = vmatpush3.bf16.msra.mxu1 %v2283_v7 }
 0x109   :  { %2153 = vmatprep.subr.bf16.mxu1 %v2284_v8 }
 0x10c   :  { %2154 = vmatpush3.bf16.msra.mxu1 %v2284_v8 }
 0x10d   :  { %2155 = vmatprep.subr.bf16.mxu1 %v2285_v10 }
 0x10e   :  { %2124 = vmatmul.mubr.bf16.gmra.mxu1 %v169_v38 }
 0x110   :  { %2156 = vmatpush3.bf16.msra.mxu1 %v2285_v10 }
 0x111   :  { %2157 = vmatprep.subr.bf16.mxu1 %v2286_v11 }
 0x114   :  { %2158 = vmatpush3.bf16.msra.mxu1 %v2286_v11 }
 0x115   :  { %2159 = vmatprep.subr.bf16.mxu1 %v2287_v12 }
 0x118   :  { %2160 = vmatpush3.bf16.msra.mxu1 %v2287_v12 }
 0x1a6   :  { %v2097_v40 = vpop.f32.mrf.mxu1 }
 0x1a8   :  { %v416_v41 = vpop.f32.mrf.mxu1 }
 0x1aa   :  { %v2087_v42 = vpop.f32.mrf.mxu0  ;;  %v2098_v43 = vpop.f32.mrf.mxu1 }
 0x1ab   :  { %v452_v51 = vpack.c.bf16 %v2098_v43, %v2097_v40 }
 0x1ac   :  { %v339_v44 = vpop.f32.mrf.mxu0  ;;  %v419_v45 = vpop.f32.mrf.mxu1 }
 0x1ad   :  { %v451_v46 = vpack.c.bf16 %v419_v45, %v416_v41 }
 0x1ae   :  { %v2088_v47 = vpop.f32.mrf.mxu0 }
 0x1af   :  { %686 = vmatprep.mubr.bf16.mxu0 %v451_v46  ;;  %v448_v54 = vpack.c.bf16 %v2088_v47, %v2087_v42 }
 0x1b0   :  { %v342_v48 = vpop.f32.mrf.mxu0 }
 0x1b1   :  { %v447_v49 = vpack.c.bf16 %v342_v48, %v339_v44 }
 0x1b3   :  { %687 = vmatmul.mubr.bf16.vlgmr.msra.gmra.mxu0 %v447_v49 }
 0x1b4   :  { %694 = vmatprep.mubr.bf16.mxu0 %v452_v51  ;;  %2128 = vmatpush3.bf16.msra.mxu0 %v2275_v39 }
 0x1b5   :  { %2129 = vmatprep.subr.bf16.mxu0 %v2276_v50 }
 0x1b6   :  { %v2101_v52 = vpop.f32.mrf.mxu1 }
 0x1b8   :  { %v432_v53 = vpop.f32.mrf.mxu1  ;;  %2130 = vmatpush3.bf16.msra.mxu0 %v2276_v50 }
 0x1b9   :  { %2131 = vmatprep.subr.bf16.mxu0 %v2277_v1 }
 0x1ba   :  { %v2091_v55 = vpop.f32.mrf.mxu0  ;;  %v2102_v56 = vpop.f32.mrf.mxu1 }
 0x1bb   :  { %695 = vmatmul.mubr.bf16.gmra.mxu0 %v448_v54  ;;  %v454_v63 = vpack.c.bf16 %v2102_v56, %v2101_v52 }
 0x1bc   :  { %v355_v57 = vpop.f32.mrf.mxu0  ;;  %v435_v58 = vpop.f32.mrf.mxu1  ;;  %2132 = vmatpush3.bf16.msra.mxu0 %v2277_v1 }
 0x1bd   :  { %v453_v59 = vpack.c.bf16 %v435_v58, %v432_v53  ;;  %2133 = vmatprep.subr.bf16.mxu0 %v2278_v2 }
 0x1be   :  { %v2092_v60 = vpop.f32.mrf.mxu0 }
 0x1bf   :  { %702 = vmatprep.mubr.bf16.mxu0 %v453_v59  ;;  %v450_v0 = vpack.c.bf16 %v2092_v60, %v2091_v55 }
 0x1c0   :  { %v358_v61 = vpop.f32.mrf.mxu0  ;;  %2134 = vmatpush3.bf16.msra.mxu0 %v2278_v2 }
 0x1c1   :  { %v449_v62 = vpack.c.bf16 %v358_v61, %v355_v57  ;;  %2135 = vmatprep.subr.bf16.mxu0 %v2279_v3 }
 0x1c3   :  { %703 = vmatmul.mubr.bf16.gmra.mxu0 %v449_v62 }
 0x1c4   :  { %710 = vmatprep.mubr.bf16.mxu0 %v454_v63  ;;  %2136 = vmatpush3.bf16.msra.mxu0 %v2279_v3 }
 0x1c5   :  { %2137 = vmatprep.subr.bf16.mxu0 %v2280_v4 }
 0x1c6   :  { %v2121_v13 = vpop.f32.mrf.mxu1 }
 0x1c8   :  { %2138 = vmatpush3.bf16.msra.mxu0 %v2280_v4  ;;  %v753_v15 = vpop.f32.mrf.mxu1 }
 0x1c9   :  { %2139 = vmatprep.subr.bf16.mxu0 %v2281_v5 }
 0x1ca   :  { %v2122_v20 = vpop.f32.mrf.mxu1 }
 0x1cb   :  { %711 = vmatmul.mubr.bf16.gmra.mxu0 %v450_v0 }
 0x1cc   :  { %2140 = vmatpush3.bf16.msra.mxu0 %v2281_v5  ;;  %v756_v29 = vpop.f32.mrf.mxu1 }
 0x1cd   :  { %2141 = vmatprep.subr.bf16.mxu0 %v2282_v6 }
 0x1ce   :  { %v2125_v42 = vpop.f32.mrf.mxu1 }
 0x1d0   :  { %2142 = vmatpush3.bf16.msra.mxu0 %v2282_v6  ;;  %v769_v52 = vpop.f32.mrf.mxu1 }
 0x1d2   :  { %v2126_v59 = vpop.f32.mrf.mxu1 }
 0x1d4   :  { %v772_v5 = vpop.f32.mrf.mxu1 }
 0x273   :  { %v1973_v14 = vpop.f32.mrf.mxu0 }
 0x275   :  { %v1974_v16 = vpop.f32.mrf.mxu0 }
 0x276   :  { %v1975_v18 = vadd.f32 %v1974_v16, %v1973_v14 }
 0x277   :  { %v1976_v19 = vpop.f32.mrf.mxu0 }
 0x278   :  { %v689_v21 = vadd.f32 %v1975_v18, %v2802_v17 }
 0x279   :  { %v1977_v22 = vpop.f32.mrf.mxu0 }
 0x27a   :  { %v1978_v23 = vadd.f32 %v1977_v22, %v1976_v19  ;;  %v754_v24 = vadd.f32 %v753_v15, %v689_v21 }
 0x27b   :  { %v1979_v25 = vpop.f32.mrf.mxu0 }
 0x27c   :  { %v692_v32 = vadd.f32 %v1978_v23, %v2802_v17  ;;  %v792_v38 = vmul.f32 0.2, %v754_v24  ;;  %vm784_vm1 = vcmp.ge.f32.partialorder %v754_v24, 0.0 }
 0x27d   :  { %v1980_v35 = vpop.f32.mrf.mxu0 }
 0x27e   :  { %v1981_v39 = vadd.f32 %v1980_v35, %v1979_v25  ;;  %v757_v40 = vadd.f32 %v756_v29, %v692_v32  ;;  %v800_v48 = vsel %vm784_vm1, %v754_v24, %v792_v38  ;;  %v2288_v38 = vld [vmem:[#allocation8 + $0x10] sm:$0xff]   ;;  %vm1245_vm1 = vcmask 523264  }
 0x27f   :  { %v1982_v41 = vpop.f32.mrf.mxu0  ;;  %2161 = vmatprep.subr.bf16.mxu1 %v2288_v38 }
 0x280   :  { %v697_v43 = vadd.f32 %v1981_v39, %v2802_v17  ;;  %vm785_vm2 = vcmp.ge.f32.partialorder %v757_v40, 0.0  ;;  %v793_v44 = vmul.f32 0.2, %v757_v40  ;;  %2162 = vmatpush3.bf16.msra.mxu1 %v2288_v38  ;;  %v2289_v39 = vld [vmem:[#allocation8 + $0x8] sm:$0xff]  }
 0x281   :  { %v1983_v45 = vpop.f32.mrf.mxu0  ;;  %2163 = vmatprep.subr.bf16.mxu1 %v2289_v39 }
 0x282   :  { %v762_v46 = vadd.f32 %v2121_v13, %v697_v43  ;;  %v1984_v47 = vadd.f32 %v1983_v45, %v1982_v41  ;;  %v801_v49 = vsel %vm785_vm2, %v757_v40, %v793_v44  ;;  %v2290_v40 = vld [vmem:[#allocation8] sm:$0xff]   ;;  %vm2513_vm2 = vmmov 0  }
 0x283   :  { %v1985_v50 = vpop.f32.mrf.mxu0  ;;  %v808_v51 = vpack.c.bf16 %v801_v49, %v800_v48  ;;  %v1888_v41 = vld [vmem:[%s2942_s8] ss:$0 sm:$0xff] }
 0x284   :  { %v700_v53 = vadd.f32 %v1984_v47, %v2802_v17  ;;  %v794_v55 = vmul.f32 0.2, %v762_v46  ;;  %vm786_vm3 = vcmp.ge.f32.partialorder %v762_v46, 0.0  ;;  %2164 = vmatpush3.bf16.msra.mxu1 %v2289_v39  ;;  %v2302_v39 = vld [vmem:[%s2945_s11 + $0x10] sm:$0xff]  }
 0x285   :  { %v1986_v54 = vpop.f32.mrf.mxu0  ;;  %2143 = vmatprep.mubr.bf16.mxu0 %v808_v51  ;;  %2165 = vmatprep.subr.bf16.mxu1 %v2290_v40 }
 0x286   :  { %v765_v56 = vadd.f32 %v2122_v20, %v700_v53  ;;  %v1987_v57 = vadd.f32 %v1986_v54, %v1985_v50  ;;  %v802_v63 = vsel %vm786_vm3, %v762_v46, %v794_v55 }
 0x287   :  { %v1988_v58 = vpop.f32.mrf.mxu0 }
 0x288   :  { %vm787_vm4 = vcmp.ge.f32.partialorder %v765_v56, 0.0  ;;  %v795_v60 = vmul.f32 0.2, %v765_v56  ;;  %v705_v61 = vadd.f32 %v1987_v57, %v2802_v17  ;;  %2166 = vmatpush3.bf16.msra.mxu1 %v2290_v40  ;;  %v2303_v40 = vld [vmem:[%s2945_s11 + $0x48] sm:$0xff]  }
 0x289   :  { %v1989_v62 = vpop.f32.mrf.mxu0 }
 0x28a   :  { %v803_v0 = vsel %vm787_vm4, %v765_v56, %v795_v60  ;;  %v1990_v1 = vadd.f32 %v1989_v62, %v1988_v58  ;;  %v770_v2 = vadd.f32 %v769_v52, %v705_v61 }
 0x28b   :  { %v809_v3 = vpack.c.bf16 %v803_v0, %v802_v63  ;;  %v1991_v4 = vpop.f32.mrf.mxu0 }
 0x28c   :  { %v708_v6 = vadd.f32 %v1990_v1, %v2802_v17  ;;  %v796_v8 = vmul.f32 0.2, %v770_v2  ;;  %vm788_vm5 = vcmp.ge.f32.partialorder %v770_v2, 0.0 }
 0x28d   :  { %v1992_v7 = vpop.f32.mrf.mxu0  ;;  %2144 = vmatmul.mubr.bf16.vlgmr.msra.gmra.mxu0 %v809_v3 }
 0x28e   :  { %v1993_v10 = vadd.f32 %v1992_v7, %v1991_v4  ;;  %v773_v11 = vadd.f32 %v772_v5, %v708_v6  ;;  %v804_v19 = vsel %vm788_vm5, %v770_v2, %v796_v8 }
 0x28f   :  { %v1994_v12 = vpop.f32.mrf.mxu0 }
 0x290   :  { %v713_v13 = vadd.f32 %v1993_v10, %v2802_v17  ;;  %vm789_vm6 = vcmp.ge.f32.partialorder %v773_v11, 0.0  ;;  %v797_v14 = vmul.f32 0.2, %v773_v11 }
 0x291   :  { %v1995_v15 = vpop.f32.mrf.mxu0 }
 0x292   :  { %v778_v16 = vadd.f32 %v2125_v42, %v713_v13  ;;  %v1996_v18 = vadd.f32 %v1995_v15, %v1994_v12  ;;  %v805_v20 = vsel %vm789_vm6, %v773_v11, %v797_v14  ;;  %v1229_v14 = vpop.trf.xlu0  ;;  %v2291_v15 = vld [vmem:[%s2945_s11 + $0x78] sm:$0xff]  }
 0x293   :  { %v810_v21 = vpack.c.bf16 %v805_v20, %v804_v19  ;;  %2043 = vmatprep.subr.bf16.mxu1 %v2291_v15  ;;  %v2295_v19 = vld [vmem:[%s2945_s11 + $0x68] sm:$0xff]  }
 0x294   :  { %v716_v22 = vadd.f32 %v1996_v18, %v2802_v17  ;;  %v798_v23 = vmul.f32 0.2, %v778_v16  ;;  %vm790_vm7 = vcmp.ge.f32.partialorder %v778_v16, 0.0  ;;  %v2293_v18 = vld [vmem:[%s2945_s11 + $0x70] sm:$0xff]   ;;  %v2296_v20 = vld [vmem:[%s2945_s11 + $0x28] sm:$0xff]  }
 0x295   :  { %2147 = vmatprep.mubr.bf16.mxu0 %v810_v21  ;;  %v2297_v21 = vld [vmem:[%s2945_s11 + $0x60] sm:$0xff]  }
 0x296   :  { %v781_v24 = vadd.f32 %v2126_v59, %v716_v22  ;;  %v806_v29 = vsel %vm790_vm7, %v778_v16, %v798_v23  ;;  %v2292_v16 = vld [vmem:[%s2945_s11 + $0x38] sm:$0xff]   ;;  %v2298_v22 = vld [vmem:[%s2945_s11 + $0x20] sm:$0xff]  }
 0x297   :  { %v2299_v23 = vld [vmem:[%s2945_s11 + $0x58] sm:$0xff]  }
 0x298   :  { %v799_v25 = vmul.f32 0.2, %v781_v24  ;;  %vm791_vm8 = vcmp.ge.f32.partialorder %v781_v24, 0.0 }
 0x29a   :  { %v807_v32 = vsel %vm791_vm8, %v781_v24, %v799_v25 }
 0x29b   :  { %v811_v35 = vpack.c.bf16 %v807_v32, %v806_v29  ;;  %v2300_v29 = vld [vmem:[%s2945_s11 + $0x18] sm:$0xff]   ;;  %v2301_v32 = vld [vmem:[%s2945_s11 + $0x50] sm:$0xff]  }
 0x29d   :  { %2148 = vmatmul.mubr.bf16.gmra.mxu0 %v811_v35 }
 0x29e   :  { %2191 = vmatprep.mubr.msk.f32.mxu0 %vm1245_vm1, %v1229_v14 }
 0x34d   :  { %v2145_v17 = vpop.f32.mrf.mxu0 }
 0x34e   :  { %v926_v44 = vadd.f32 %v2145_v17, %v1888_v41  ;;  %v1897_v17 = vld [vmem:[%s2944_s10] ss:$0 sm:$0xff] }
 0x34f   :  { %v917_v42 = vpop.f32.mrf.mxu0 }
 0x350   :  { %v918_v43 = vadd.f32 %v1888_v41, %v917_v42  ;;  %v958_v51 = vmul.f32 0.2, %v926_v44  ;;  %vm950_vm11 = vcmp.ge.f32.partialorder %v926_v44, 0.0 }
 0x351   :  { %v2146_v45 = vpop.f32.mrf.mxu0 }
 0x352   :  { %v929_v46 = vadd.f32 %v2146_v45, %v1888_v41  ;;  %v956_v48 = vmul.f32 0.2, %v918_v43  ;;  %vm948_vm10 = vcmp.ge.f32.partialorder %v918_v43, 0.0  ;;  %v966_v56 = vsel %vm950_vm11, %v926_v44, %v958_v51 }
 0x353   :  { %v920_v47 = vpop.f32.mrf.mxu0 }
 0x354   :  { %vm951_vm9 = vcmp.ge.f32.partialorder %v929_v46, 0.0  ;;  %v959_v49 = vmul.f32 0.2, %v929_v46  ;;  %v921_v50 = vadd.f32 %v1888_v41, %v920_v47  ;;  %v964_v54 = vsel %vm948_vm10, %v918_v43, %v956_v48 }
 0x356   :  { %vm949_vm12 = vcmp.ge.f32.partialorder %v921_v50, 0.0  ;;  %v957_v52 = vmul.f32 0.2, %v921_v50  ;;  %v967_v53 = vsel %vm951_vm9, %v929_v46, %v959_v49 }
 0x357   :  { %v973_v58 = vpack.c.bf16 %v967_v53, %v966_v56 }
 0x358   :  { %v965_v55 = vsel %vm949_vm12, %v921_v50, %v957_v52 }
 0x359   :  { %v972_v57 = vpack.c.bf16 %v965_v55, %v964_v54 }
 0x35b   :  { %2167 = vmatprep.mubr.bf16.mxu1 %v972_v57 }
 0x35c   :  { %2168 = vmatmul.mubr.bf16.vlgmr.msra.gmra.mxu1 %v973_v58 }
 0x35d   :  { %v2149_v59 = vpop.f32.mrf.mxu0  ;;  %2044 = vmatpush3.bf16.msra.mxu1 %v2292_v16 }
 0x35e   :  { %v942_v62 = vadd.f32 %v2149_v59, %v1888_v41  ;;  %2045 = vmatprep.subr.bf16.mxu1 %v2293_v18 }
 0x35f   :  { %v933_v60 = vpop.f32.mrf.mxu0 }
 0x360   :  { %v934_v61 = vadd.f32 %v1888_v41, %v933_v60  ;;  %v962_v5 = vmul.f32 0.2, %v942_v62  ;;  %vm954_vm15 = vcmp.ge.f32.partialorder %v942_v62, 0.0 }
 0x361   :  { %v2150_v63 = vpop.f32.mrf.mxu0 }
 0x362   :  { %v945_v0 = vadd.f32 %v2150_v63, %v1888_v41  ;;  %v960_v2 = vmul.f32 0.2, %v934_v61  ;;  %vm952_vm14 = vcmp.ge.f32.partialorder %v934_v61, 0.0  ;;  %v970_v12 = vsel %vm954_vm15, %v942_v62, %v962_v5 }
 0x363   :  { %v936_v1 = vpop.f32.mrf.mxu0 }
 0x364   :  { %vm955_vm13 = vcmp.ge.f32.partialorder %v945_v0, 0.0  ;;  %v963_v3 = vmul.f32 0.2, %v945_v0  ;;  %v937_v4 = vadd.f32 %v1888_v41, %v936_v1  ;;  %v968_v8 = vsel %vm952_vm14, %v934_v61, %v960_v2 }
 0x366   :  { %vm953_vm0 = vcmp.ge.f32.partialorder %v937_v4, 0.0  ;;  %v961_v6 = vmul.f32 0.2, %v937_v4  ;;  %v971_v7 = vsel %vm955_vm13, %v945_v0, %v963_v3 }
 0x367   :  { %v975_v13 = vpack.c.bf16 %v971_v7, %v970_v12 }
 0x368   :  { %v969_v10 = vsel %vm953_vm0, %v937_v4, %v961_v6 }
 0x369   :  { %v974_v11 = vpack.c.bf16 %v969_v10, %v968_v8 }
 0x36b   :  { %2171 = vmatprep.mubr.bf16.mxu1 %v974_v11 }
 0x36c   :  { %2172 = vmatmul.mubr.bf16.gmra.mxu1 %v975_v13 }
 0x36d   :  { %1509 = vmatprep.mubr.bf16.mxu1 %v2691_v9  ;;  %v2294_v9 = vld [vmem:[%s2945_s11 + $0x30] sm:$0xff]  }
 0x36e   :  { %2046 = vmatpush3.bf16.msra.mxu1 %v2294_v9 }
 0x36f   :  { %2047 = vmatprep.subr.bf16.mxu1 %v2295_v19 }
 0x372   :  { %2048 = vmatpush3.bf16.msra.mxu1 %v2296_v20 }
 0x373   :  { %2049 = vmatprep.subr.bf16.mxu1 %v2297_v21 }
 0x376   :  { %2050 = vmatpush3.bf16.msra.mxu1 %v2298_v22 }
 0x377   :  { %2051 = vmatprep.subr.bf16.mxu1 %v2299_v23 }
 0x37a   :  { %2052 = vmatpush3.bf16.msra.mxu1 %v2300_v29 }
 0x37b   :  { %2053 = vmatprep.subr.bf16.mxu1 %v2301_v32 }
 0x37e   :  { %2054 = vmatpush3.bf16.msra.mxu1 %v2302_v39 }
 0x37f   :  { %2055 = vmatprep.subr.bf16.mxu1 %v2303_v40 }
 0x41c   :  { %v2169_v24 = vpop.f32.mrf.mxu1 }
 0x41d   :  { %v1090_v44 = vadd.f32 %v2169_v24, %v1897_v17 }
 0x41e   :  { %v1081_v25 = vpop.f32.mrf.mxu1 }
 0x41f   :  { %v1082_v42 = vadd.f32 %v1897_v17, %v1081_v25 }
 0x420   :  { %v2170_v35 = vpop.f32.mrf.mxu1 }
 0x421   :  { %v1093_v48 = vadd.f32 %v2170_v35, %v1897_v17 }
 0x422   :  { %v1084_v38 = vpop.f32.mrf.mxu1 }
 0x423   :  { %v1085_v41 = vadd.f32 %v1897_v17, %v1084_v38 }
 0x425   :  { %v1114_v43 = vadd.f32 %v1085_v41, %v1082_v42 }
 0x427   :  { %v1115_v46 = vadd.f32 %v1114_v43, %v1090_v44 }
 0x429   :  { %v1116_v51 = vadd.f32 %v1115_v46, %v1093_v48 }
 0x42c   :  { %v2173_v45 = vpop.f32.mrf.mxu1 }
 0x42d   :  { %v1106_v55 = vadd.f32 %v2173_v45, %v1897_v17 }
 0x42e   :  { %v1097_v47 = vpop.f32.mrf.mxu1 }
 0x42f   :  { %v1098_v49 = vadd.f32 %v1897_v17, %v1097_v47 }
 0x430   :  { %v2174_v50 = vpop.f32.mrf.mxu1 }
 0x431   :  { %v1117_v53 = vadd.f32 %v1116_v51, %v1098_v49  ;;  %v1109_v57 = vadd.f32 %v2174_v50, %v1897_v17 }
 0x432   :  { %v1100_v52 = vpop.f32.mrf.mxu1 }
 0x433   :  { %v1101_v54 = vadd.f32 %v1897_v17, %v1100_v52 }
 0x435   :  { %v1118_v56 = vadd.f32 %v1117_v53, %v1101_v54 }
 0x437   :  { %v1119_v58 = vadd.f32 %v1118_v56, %v1106_v55 }
 0x439   :  { %v1120_v59 = vadd.f32 %v1119_v58, %v1109_v57 }
 0x43b   :  { %v1121_v60 = vrot.slane %v1120_v59, 4 }
 0x43d   :  { %v1122_v61 = vadd.f32 %v1121_v60, %v1120_v59 }
 0x43f   :  { %v1123_v62 = vrot.slane %v1122_v61, 2 }
 0x441   :  { %v1124_v63 = vadd.f32 %v1123_v62, %v1122_v61 }
 0x443   :  { %v1125_v0 = vrot.slane %v1124_v63, 1 }
 0x445   :  { %v1126_v1 = vadd.f32 %v1125_v0, %v1124_v63 }
 0x447   :  { %v1128_v2 = vmul.f32 0.015625, %v1126_v1 }
 0x449   :  { %v1129_v3 = vsub.f32 %v1082_v42, %v1128_v2  ;;  %v1130_v4 = vsub.f32 %v1085_v41, %v1128_v2  ;;  %v1131_v5 = vsub.f32 %v1090_v44, %v1128_v2  ;;  %v1132_v6 = vsub.f32 %v1093_v48, %v1128_v2  ;;  %v1906_v44 = vld [vmem:[%s2951_s17] ss:$0 sm:$0xff] }
 0x44a   :  { %v1133_v10 = vsub.f32 %v1098_v49, %v1128_v2  ;;  %v1134_v13 = vsub.f32 %v1101_v54, %v1128_v2  ;;  %v1135_v16 = vsub.f32 %v1106_v55, %v1128_v2  ;;  %v1136_v19 = vsub.f32 %v1109_v57, %v1128_v2  ;;  %v1907_v49 = vld [vmem:[%s2952_s18] ss:$0 sm:$0xff] }
 0x44b   :  { %v1137_v7 = vmul.f32 %v1129_v3, %v1129_v3  ;;  %v1138_v8 = vmul.f32 %v1130_v4, %v1130_v4  ;;  %v1139_v11 = vmul.f32 %v1131_v5, %v1131_v5  ;;  %v1140_v14 = vmul.f32 %v1132_v6, %v1132_v6 }
 0x44c   :  { %v1141_v18 = vmul.f32 %v1133_v10, %v1133_v10  ;;  %v1142_v20 = vmul.f32 %v1134_v13, %v1134_v13  ;;  %v1143_v22 = vmul.f32 %v1135_v16, %v1135_v16  ;;  %v1144_v24 = vmul.f32 %v1136_v19, %v1136_v19 }
 0x44d   :  { %v1145_v12 = vadd.f32 %v1138_v8, %v1137_v7 }
 0x44f   :  { %v1146_v15 = vadd.f32 %v1145_v12, %v1139_v11 }
 0x451   :  { %v1147_v9 = vadd.f32 %v1146_v15, %v1140_v14  ;;  %v1332_v15 = vpop.permute.xlu1 %1331 }
 0x453   :  { %v1148_v21 = vadd.f32 %v1147_v9, %v1141_v18 }
 0x455   :  { %v1149_v23 = vadd.f32 %v1148_v21, %v1142_v20  ;;  %v1337_v18 = vpop.permute.xlu1 %1336 }
 0x457   :  { %v1150_v25 = vadd.f32 %v1149_v23, %v1143_v22  ;;  %v2311_v22 = vld [vmem:[#allocation10 + $0x18] sm:$0xff]   ;;  %v2312_v23 = vld [vmem:[#allocation10 + $0x10] sm:$0xff]  }
 0x459   :  { %v1151_v29 = vadd.f32 %v1150_v25, %v1144_v24  ;;  %v2313_v24 = vld [vmem:[#allocation10 + $0x8] sm:$0xff]   ;;  %v2314_v25 = vld [vmem:[#allocation10] sm:$0xff]  }
 0x45b   :  { %v1152_v32 = vrot.slane %v1151_v29, 4 }
 0x45d   :  { %v1153_v35 = vadd.f32 %v1152_v32, %v1151_v29  ;;  %v2315_v29 = vld [vmem:[#allocation11 + $0x38] sm:$0xff]   ;;  %v2316_v32 = vld [vmem:[#allocation11 + $0x30] sm:$0xff]  }
 0x45f   :  { %v1154_v38 = vrot.slane %v1153_v35, 2 }
 0x461   :  { %v1155_v39 = vadd.f32 %v1154_v38, %v1153_v35  ;;  %v2317_v35 = vld [vmem:[#allocation11 + $0x28] sm:$0xff]   ;;  %v2318_v38 = vld [vmem:[#allocation11 + $0x20] sm:$0xff]  }
 0x463   :  { %v1156_v40 = vrot.slane %v1155_v39, 1 }
 0x465   :  { %v1157_v17 = vadd.f32 %v1156_v40, %v1155_v39  ;;  %v2319_v39 = vld [vmem:[#allocation11 + $0x18] sm:$0xff]  }
 0x467   :  { %v1158_v41 = vmul.f32 0.015625, %v1157_v17  ;;  %v1910_v17 = vld [vmem:[%s2946_s12] ss:$0 sm:$0xff] }
 0x469   :  { %v1159_v42 = vadd.f32 1e-05, %v1158_v41 }
 0x46b   :  { %2323 = vrsqrt.f32 %v1159_v42 }
 0x478   :  { %v2324_v43 = vpop.eup %2323 }
 0x479   :  { %v1166_v45 = vmul.f32 %v2324_v43, %v1134_v13  ;;  %v1168_v46 = vmul.f32 %v2324_v43, %v1136_v19  ;;  %v1167_v47 = vmul.f32 %v2324_v43, %v1135_v16  ;;  %v1165_v48 = vmul.f32 %v2324_v43, %v1133_v10 }
 0x47a   :  { %v1164_v50 = vmul.f32 %v2324_v43, %v1132_v6  ;;  %v1163_v51 = vmul.f32 %v2324_v43, %v1131_v5  ;;  %v1162_v52 = vmul.f32 %v2324_v43, %v1130_v4  ;;  %v1161_v53 = vmul.f32 %v2324_v43, %v1129_v3 }
 0x47b   :  { %v1182_v54 = vmul.f32 %v1906_v44, %v1168_v46  ;;  %v1181_v55 = vmul.f32 %v1906_v44, %v1167_v47  ;;  %v1180_v56 = vmul.f32 %v1906_v44, %v1166_v45  ;;  %v1179_v57 = vmul.f32 %v1906_v44, %v1165_v48 }
 0x47c   :  { %v1178_v58 = vmul.f32 %v1906_v44, %v1164_v50  ;;  %v1177_v59 = vmul.f32 %v1906_v44, %v1163_v51  ;;  %v1176_v60 = vmul.f32 %v1906_v44, %v1162_v52  ;;  %v1175_v61 = vmul.f32 %v1906_v44, %v1161_v53  ;;  %v2320_v53 = vld [vmem:[#allocation11 + $0x10] sm:$0xff]  }
 0x47d   :  { %v1196_v62 = vadd.f32 %v1907_v49, %v1182_v54  ;;  %v1195_v63 = vadd.f32 %v1907_v49, %v1181_v55  ;;  %v1194_v0 = vadd.f32 %v1907_v49, %v1180_v56  ;;  %v1193_v1 = vadd.f32 %v1907_v49, %v1179_v57  ;;  %v2321_v54 = vld [vmem:[#allocation11 + $0x8] sm:$0xff]   ;;  %v2322_v55 = vld [vmem:[#allocation11] sm:$0xff]  }
 0x47e   :  { %v1192_v2 = vadd.f32 %v1907_v49, %v1178_v58  ;;  %v1191_v7 = vadd.f32 %v1907_v49, %v1177_v59  ;;  %v1190_v8 = vadd.f32 %v1907_v49, %v1176_v60  ;;  %v1189_v10 = vadd.f32 %v1907_v49, %v1175_v61  ;;  %v1927_v56 = vld [vmem:[%s2948_s14] ss:$0 sm:$0xff] }
 0x47f   :  { %v1204_v5 = vadd.f32 %v1196_v62, %v2795_v37  ;;  %2175 = vmatprep.subr.mxu0 %v1196_v62  ;;  %v1203_v3 = vadd.f32 %v1195_v63, %v2793_v36  ;;  %v1202_v4 = vadd.f32 %v1194_v0, %v2789_v34  ;;  %v1201_v6 = vadd.f32 %v1193_v1, %v2787_v33  ;;  %v2307_v33 = vld [vmem:[#allocation10 + $0x38] sm:$0xff]   ;;  %v2308_v34 = vld [vmem:[#allocation10 + $0x30] sm:$0xff]   ;;  %v2309_v36 = vld [vmem:[#allocation10 + $0x28] sm:$0xff]  }
 0x480   :  { %2176 = vmatpush3.msra.mxu0 %v1196_v62  ;;  %v1200_v11 = vadd.f32 %v1192_v2, %v2783_v31  ;;  %v1199_v12 = vadd.f32 %v1191_v7, %v2781_v30  ;;  %v1198_v13 = vadd.f32 %v1190_v8, %v2777_v27  ;;  %v1197_v14 = vadd.f32 %v1189_v10, %v2775_v26  ;;  %v1230_v26 = vpop.trf.xlu0  ;;  %v2304_v27 = vld [vmem:[%s2945_s11 + $0x8] sm:$0xff]   ;;  %v2305_v30 = vld [vmem:[%s2945_s11 + $0x40] sm:$0xff]  }
 0x481   :  { %1212 = vst [vmem:[#allocation14 + $0x38] sm:$0xff] %v1204_v5  ;;  %1211 = vst [vmem:[#allocation14 + $0x30] sm:$0xff] %v1203_v3  ;;  %2177 = vmatprep.subr.mxu0 %v1195_v63  ;;  %2056 = vmatpush3.bf16.msra.mxu1 %v2304_v27  ;;  %v2306_v31 = vld [vmem:[%s2945_s11] sm:$0xff]  }
 0x482   :  { %1210 = vst [vmem:[#allocation14 + $0x28] sm:$0xff] %v1202_v4  ;;  %1209 = vst [vmem:[#allocation14 + $0x20] sm:$0xff] %v1201_v6  ;;  %2178 = vmatpush3.msra.mxu0 %v1195_v63  ;;  %2057 = vmatprep.subr.bf16.mxu1 %v2305_v30  ;;  %v2310_v37 = vld [vmem:[#allocation10 + $0x20] sm:$0xff]  }
 0x483   :  { %1208 = vst [vmem:[#allocation14 + $0x18] sm:$0xff] %v1200_v11  ;;  %1207 = vst [vmem:[#allocation14 + $0x10] sm:$0xff] %v1199_v12  ;;  %2179 = vmatprep.subr.mxu0 %v1194_v0 }
 0x484   :  { %1206 = vst [vmem:[#allocation14 + $0x8] sm:$0xff] %v1198_v13  ;;  %1205 = vst [vmem:[#allocation14] sm:$0xff] %v1197_v14  ;;  %2180 = vmatpush3.msra.mxu0 %v1194_v0 }
 0x485   :  { %2181 = vmatprep.subr.mxu0 %v1193_v1  ;;  %2058 = vmatpush3.bf16.msra.mxu1 %v2306_v31 }
 0x486   :  { %2182 = vmatpush3.msra.mxu0 %v1193_v1  ;;  %2214 = vmatprep.subr.bf16.mxu1 %v2512_v28 }
 0x487   :  { %2183 = vmatprep.subr.mxu0 %v1192_v2 }
 0x488   :  { %2184 = vmatpush3.msra.mxu0 %v1192_v2 }
 0x489   :  { %2185 = vmatprep.subr.mxu0 %v1191_v7 }
 0x48a   :  { %2186 = vmatpush3.msra.mxu0 %v1191_v7 }
 0x48b   :  { %2187 = vmatprep.subr.mxu0 %v1190_v8 }
 0x48c   :  { %2188 = vmatpush3.msra.mxu0 %v1190_v8 }
 0x48d   :  { %2189 = vmatprep.subr.mxu0 %v1189_v10 }
 0x48e   :  { %2190 = vmatpush3.msra.mxu0 %v1189_v10 }
 0x48f   :  { %2192 = vmatmul.mubr.msk.f32.vlgmr.msra.gmra.mxu0 %vm1245_vm1, %v1230_v26  ;;  %2194 = vmatprep.subr.bf16.mxu0 %v2512_v28 }
 0x490   :  { %2195 = vmatpush3.bf16.msra.mxu0 %v2307_v33  ;;  %2210 = vmatprep.mubr.msk.bf16.mxu0 %vm2513_vm2, %v2512_v28 }
 0x491   :  { %2196 = vmatprep.subr.bf16.mxu0 %v2512_v28 }
 0x494   :  { %2197 = vmatpush3.bf16.msra.mxu0 %v2308_v34 }
 0x495   :  { %2198 = vmatprep.subr.bf16.mxu0 %v2512_v28 }
 0x498   :  { %2199 = vmatpush3.bf16.msra.mxu0 %v2309_v36 }
 0x499   :  { %2200 = vmatprep.subr.bf16.mxu0 %v2512_v28 }
 0x49c   :  { %2201 = vmatpush3.bf16.msra.mxu0 %v2310_v37 }
 0x49d   :  { %2202 = vmatprep.subr.bf16.mxu0 %v2512_v28 }
 0x4a0   :  { %2203 = vmatpush3.bf16.msra.mxu0 %v2311_v22 }
 0x4a1   :  { %2204 = vmatprep.subr.bf16.mxu0 %v2512_v28 }
 0x4a4   :  { %2205 = vmatpush3.bf16.msra.mxu0 %v2312_v23 }
 0x4a5   :  { %2206 = vmatprep.subr.bf16.mxu0 %v2512_v28 }
 0x4a8   :  { %2207 = vmatpush3.bf16.msra.mxu0 %v2313_v24 }
 0x4a9   :  { %2208 = vmatprep.subr.bf16.mxu0 %v2512_v28 }
 0x4ac   :  { %2209 = vmatpush3.bf16.msra.mxu0 %v2314_v25 }
 0x54f   :  { %v2193_v16 = vpop.f32.mrf.mxu0 }
 0x550   :  { %v1340_v19 = vmul.f32 %v2193_v16, %v1337_v18 }
 0x551   :  { %v1318_v9 = vpop.f32.mrf.mxu0 }
 0x552   :  { %v1339_v20 = vmul.f32 %v1332_v15, %v1318_v9 }
 0x554   :  { %v1341_v21 = vpack.c.bf16 %v1340_v19, %v1339_v20 }
 0x556   :  { %1510 = vmatmul.mubr.bf16.vlgmr.msra.gmra.mxu1 %v1341_v21 }
 0x557   :  { %2230 = vmatprep.mubr.msk.bf16.mxu1 %vm2513_vm2, %v2512_v28  ;;  %2215 = vmatpush3.bf16.msra.mxu1 %v2315_v29 }
 0x558   :  { %2216 = vmatprep.subr.bf16.mxu1 %v2512_v28 }
 0x55b   :  { %2217 = vmatpush3.bf16.msra.mxu1 %v2316_v32 }
 0x55c   :  { %2218 = vmatprep.subr.bf16.mxu1 %v2512_v28 }
 0x55f   :  { %2219 = vmatpush3.bf16.msra.mxu1 %v2317_v35 }
 0x560   :  { %2220 = vmatprep.subr.bf16.mxu1 %v2512_v28 }
 0x563   :  { %2221 = vmatpush3.bf16.msra.mxu1 %v2318_v38 }
 0x564   :  { %2222 = vmatprep.subr.bf16.mxu1 %v2512_v28 }
 0x567   :  { %2223 = vmatpush3.bf16.msra.mxu1 %v2319_v39 }
 0x568   :  { %2224 = vmatprep.subr.bf16.mxu1 %v2512_v28 }
 0x56b   :  { %2225 = vmatpush3.bf16.msra.mxu1 %v2320_v53 }
 0x56c   :  { %2226 = vmatprep.subr.bf16.mxu1 %v2512_v28 }
 0x56f   :  { %2227 = vmatpush3.bf16.msra.mxu1 %v2321_v54 }
 0x570   :  { %2228 = vmatprep.subr.bf16.mxu1 %v2512_v28 }
 0x573   :  { %2229 = vmatpush3.bf16.msra.mxu1 %v2322_v55 }
 0x616   :  { %v2059_v40 = vpop.f32.mrf.mxu1 }
 0x618   :  { %v2060_v41 = vpop.f32.mrf.mxu1 }
 0x619   :  { %v2061_v42 = vadd.f32 %v2060_v41, %v2059_v40 }
 0x61a   :  { %v2062_v43 = vpop.f32.mrf.mxu1 }
 0x61b   :  { %v1512_v44 = vadd.f32 %v2061_v42, %v1910_v17 }
 0x61c   :  { %v2063_v45 = vpop.f32.mrf.mxu1 }
 0x61d   :  { %v2064_v46 = vadd.f32 %v2063_v45, %v2062_v43  ;;  %v1520_v47 = vmul.f32 0.2, %v1512_v44  ;;  %vm1518_vm3 = vcmp.ge.f32.partialorder %v1512_v44, 0.0 }
 0x61f   :  { %v1515_v48 = vadd.f32 %v2064_v46, %v1910_v17  ;;  %v1522_v50 = vsel %vm1518_vm3, %v1512_v44, %v1520_v47 }
 0x621   :  { %vm1519_vm4 = vcmp.ge.f32.partialorder %v1515_v48, 0.0  ;;  %v1521_v49 = vmul.f32 0.2, %v1515_v48 }
 0x623   :  { %v1523_v51 = vsel %vm1519_vm4, %v1515_v48, %v1521_v49 }
 0x624   :  { %v1524_v52 = vpack.c.bf16 %v1523_v51, %v1522_v50 }
 0x626   :  { %2211 = vmatmul.mubr.bf16.vlgmr.msra.gmra.mxu0 %v1524_v52 }
 0x6e6   :  { %v1630_v57 = vpop.f32.mrf.mxu0 }
 0x6e7   :  { %v1631_v58 = vadd.f32 %v1927_v56, %v1630_v57 }
 0x6e8   :  { %v2212_v59 = vpop.f32.mrf.mxu0 }
 0x6e9   :  { %v1639_v61 = vmul.f32 0.2, %v1631_v58  ;;  %vm1637_vm5 = vcmp.ge.f32.partialorder %v1631_v58, 0.0 }
 0x6ea   :  { %v1633_v60 = vpop.f32.mrf.mxu0 }
 0x6eb   :  { %v1634_v62 = vadd.f32 %v1927_v56, %v1633_v60  ;;  %v1641_v1 = vsel %vm1637_vm5, %v1631_v58, %v1639_v61 }
 0x6ec   :  { %v2213_v63 = vpop.f32.mrf.mxu0 }
 0x6ed   :  { %vm1638_vm6 = vcmp.ge.f32.partialorder %v1634_v62, 0.0  ;;  %v1640_v0 = vmul.f32 0.2, %v1634_v62 }
 0x6ef   :  { %v1642_v2 = vsel %vm1638_vm6, %v1634_v62, %v1640_v0 }
 0x6f0   :  { %v1643_v7 = vpack.c.bf16 %v1642_v2, %v1641_v1 }
 0x6f2   :  { %2231 = vmatmul.mubr.bf16.vlgmr.msra.gmra.mxu1 %v1643_v7 }
 0x6f3   :  { %2460 = shalt.err (!%p2457_p6)
}
 0x6f4   :  { %1826 = dma.vmem_to_hbm [thread:$0]  %s1821_s30, 1024, %s2956_s22, [#allocation15], %s2506_s28, %s2506_s28, %s2507_s29  }
 0x6f5   :  { %v1936_v8 = vld [vmem:[%s2950_s16] ss:$0 sm:$0xff]  ;;  %s2515_s10 = smov [#allocation13]   ;;  %v2328_v43 = vld [vmem:[%s2972_s6 + $0x8] sm:$0xff] }
 0x6f6   :  { %v1945_v25 = vld [vmem:[%s2953_s19] ss:$0 sm:$0xff]  ;;  %s1808_s1 = sshll.u32 %s2515_s10, 4  ;;  %s1809_s1 = int_to_ptr.vmem [resolvable:$true] %s1808_s1 }
 0x6f7   :  { %v1946_v35 = vld [vmem:[%s2954_s20] ss:$0 sm:$0xff]  ;;  %s2469_s19 = scalar_lea.vmem %s1809_s1, 256  ;;  %p2474_p8 = scmp.lt.s32.totalorder %s1809_s1, %s1809_s1 }
 0x6f8   :  { %v2327_v41 = vld [vmem:[%s2972_s6] sm:$0xff]  ;;  %p2470_p7 = scmp.ne.s32.totalorder %s1809_s1, %s2469_s19  ;;  %p2475_p9 = scmp.lt.s32.totalorder %s2469_s19, %s2469_s19 }
 0x6fa   :  { %p2476_p10 = por %p2475_p9, %p2474_p8 }
 0x6fc   :  { %p2477_p11 = pnand %p2476_p10, %p2470_p7 }
 0x7b2   :  { %v1749_v28 = vpop.f32.mrf.mxu1 }
 0x7b3   :  { %v1750_v3 = vadd.f32 %v1936_v8, %v1749_v28 }
 0x7b4   :  { %v2232_v10 = vpop.f32.mrf.mxu1 }
 0x7b6   :  { %v1752_v5 = vpop.f32.mrf.mxu1 }
 0x7b7   :  { %v1753_v4 = vadd.f32 %v1936_v8, %v1752_v5 }
 0x7b8   :  { %v2233_v6 = vpop.f32.mrf.mxu1 }
 0x7b9   :  { %v1758_v11 = vadd.f32 %v1753_v4, %v1750_v3 }
 0x7bb   :  { %v1759_v12 = vrot.slane %v1758_v11, 4 }
 0x7bd   :  { %v1760_v13 = vadd.f32 %v1759_v12, %v1758_v11 }
 0x7bf   :  { %v1761_v14 = vrot.slane %v1760_v13, 2 }
 0x7c1   :  { %v1762_v26 = vadd.f32 %v1761_v14, %v1760_v13 }
 0x7c3   :  { %v1763_v27 = vrot.slane %v1762_v26, 1 }
 0x7c5   :  { %v1764_v30 = vadd.f32 %v1763_v27, %v1762_v26 }
 0x7c7   :  { %v1766_v31 = vmul.f32 0.0625, %v1764_v30 }
 0x7c9   :  { %v1767_v33 = vsub.f32 %v1750_v3, %v1766_v31  ;;  %v1768_v34 = vsub.f32 %v1753_v4, %v1766_v31 }
 0x7cb   :  { %v1769_v36 = vmul.f32 %v1767_v33, %v1767_v33  ;;  %v1770_v37 = vmul.f32 %v1768_v34, %v1768_v34 }
 0x7cd   :  { %v1771_v15 = vadd.f32 %v1770_v37, %v1769_v36 }
 0x7cf   :  { %v1772_v16 = vrot.slane %v1771_v15, 4 }
 0x7d1   :  { %v1773_v18 = vadd.f32 %v1772_v16, %v1771_v15 }
 0x7d3   :  { %v1774_v9 = vrot.slane %v1773_v18, 2 }
 0x7d5   :  { %v1775_v19 = vadd.f32 %v1774_v9, %v1773_v18 }
 0x7d7   :  { %v1776_v20 = vrot.slane %v1775_v19, 1 }
 0x7d9   :  { %v1777_v21 = vadd.f32 %v1776_v20, %v1775_v19 }
 0x7db   :  { %v1778_v22 = vmul.f32 0.0625, %v1777_v21 }
 0x7dd   :  { %v1779_v23 = vadd.f32 1e-05, %v1778_v22 }
 0x7df   :  { %2325 = vrsqrt.f32 %v1779_v23 }
 0x7ec   :  { %v2326_v24 = vpop.eup %2325 }
 0x7ed   :  { %v1781_v29 = vmul.f32 %v2326_v24, %v1767_v33  ;;  %v1782_v32 = vmul.f32 %v2326_v24, %v1768_v34 }
 0x7ef   :  { %v1789_v38 = vmul.f32 %v1945_v25, %v1781_v29  ;;  %v1790_v39 = vmul.f32 %v1945_v25, %v1782_v32 }
 0x7f1   :  { %v1797_v40 = vadd.f32 %v1946_v35, %v1789_v38  ;;  %v1798_v17 = vadd.f32 %v1946_v35, %v1790_v39 }
 0x7f3   :  { %v1799_v42 = vadd.f32 %v2327_v41, %v1797_v40  ;;  %v1800_v44 = vadd.f32 %v2328_v43, %v1798_v17 }
 0x7f5   :  { %1801 = vst [vmem:[#allocation13] sm:$0xff] %v1799_v42  ;;  %1802 = vst [vmem:[#allocation13 + $0x8] sm:$0xff] %v1800_v44 }
 0x7f6   :  { %2480 = shalt.err (!%p2477_p11)
}
 0x7f7   :  { %1814 = dma.vmem_to_hbm [thread:$0]  %s1809_s1, 256, %s2955_s21, [#allocation4], %s2506_s28, %s2506_s28, %s2507_s29  }
 0x7f8   :  { %2497 = dma.done.wait [#allocation4], 256  }
 0x7f9   :  { %2498 = vsyncadd [#allocation4], 4294967040 }
 0x7fa   :  { %2499 = dma.done.wait [#allocation15], 1024  }
 0x7fb   :  { %2500 = vsyncadd [#allocation15], 4294966272 }
 0x7fc   :  { %1833 = vsyncpa [#allocation3], 1 }
 0x7fd   :  { %1834 = vsyncpa [#allocation6], 1 }
 0x7fe   :  { %1835 = vsyncpa [#allocation9], 1 }
 0x7ff   :  { %1836 = vsyncpa [#allocation12], 1 }
 0x800   :  { %1837 = vsyncpa [#allocation4], 1 }
 0x801   :  { %1838 = vsyncpa [#allocation15], 1 }

</bundles_post_ra>
